<compile_context>
chip_gen: v7x
topology: tpu7x:2x2x1
jax: 0.10.0
libtpu: 0.0.40
codegen_flags: <defaults>
</compile_context>

<pallas_src>
import functools

import jax
import jax.numpy as jnp
from jax import lax
from jax.experimental import pallas as pl
from jax.experimental.pallas import tpu as pltpu

_POW2_TILES = (512, 256, 128, 64, 32, 16, 8)


def _consistency_kernel(f1_ref, f2c_ref, f2r_ref, loss_ref,
                        f1s_sc, l_sc, *maybe_m, inv_temp, static_shift):
    j = pl.program_id(1)
    m_sc = None if static_shift else maybe_m[0]

    @pl.when(j == 0)
    def _init():
        # Normalize the feat1 row tile once per row tile and cache the
        # temperature-scaled bf16 result; all column steps reuse it.
        f1 = f1_ref[...].astype(jnp.float32)
        inv = lax.rsqrt(jnp.maximum(jnp.sum(f1 * f1, axis=-1, keepdims=True), 1e-24))
        f1s_sc[...] = (f1 * (inv * inv_temp)).astype(jnp.bfloat16)
        l_sc[...] = jnp.zeros_like(l_sc)
        if not static_shift:
            m_sc[...] = jnp.full_like(m_sc, -jnp.inf)

    # sim tile [tr, tc]: bf16 operands on the MXU, f32 accumulation; contract
    # last dims of both operands (no explicit transpose). feat2 arrives
    # pre-normalized, so the inner loop has no normalization work at all.
    sim = lax.dot_general(f1s_sc[...], f2c_ref[...], (((1,), (1,)), ((), ())),
                          preferred_element_type=jnp.float32)

    if static_shift:
        # Unit vectors => |sim| <= inv_temp: static shift replaces the online max.
        p = jnp.exp(sim - inv_temp)          # sim dead after this op
        l_sc[...] += jnp.sum(p, axis=-1, keepdims=True)
    else:
        m_prev = m_sc[...]
        m_new = jnp.maximum(m_prev, jnp.max(sim, axis=-1, keepdims=True))
        alpha = jnp.exp(m_prev - m_new)
        p = jnp.exp(sim - m_new)
        l_sc[...] = alpha * l_sc[...] + jnp.sum(p, axis=-1, keepdims=True)
        m_sc[...] = m_new

    @pl.when(j == pl.num_programs(1) - 1)
    def _finalize():
        # diag_i = <f1n_i, f2n_i> / temperature (1/temp already folded into f1s).
        diag = jnp.sum(f1s_sc[...].astype(jnp.float32) *
                       f2r_ref[...].astype(jnp.float32),
                       axis=-1, keepdims=True)
        if static_shift:
            lse = inv_temp + jnp.log(l_sc[...])
        else:
            lse = m_sc[...] + jnp.log(l_sc[...])
        loss_ref[...] = lse - diag


def _pick_tile(n, cap):
    for t in _POW2_TILES:
        if t <= cap and t <= n and n % t == 0:
            return t
    return n  # block == full extent is always layout-legal


def _vmem_bytes(tr, tc, d):
    # Double-buffered inputs: feat1 (f32) + feat2 column tile (bf16) + feat2 row tile (bf16).
    inputs = 2 * (tr * d * 4 + tc * d * 2 + tr * d * 2)
    # f1s scratch (bf16) + two lane-padded (tr,1) f32 vectors.
    scratch = tr * d * 2 + 2 * tr * 128 * 4
    interm = 2 * tr * tc * 4                 # sim + p f32 slabs
    return inputs + scratch + interm


def _vmem_budget_bytes():
    try:
        cap = int(pltpu.get_tpu_info().vmem_capacity_bytes)
    except Exception:
        cap = 64 << 20                       # conservative: v7x per-TC physical VMEM
    # Stay well under the 32 MiB scoped limit we request below.
    return min(cap // 3, 20 << 20)


def _consistency_loss_xla(feat1, feat2, temperature=0.5):
    """Plain-XLA path (also used as fallback for tiny / awkward shapes)."""
    f1 = feat1.astype(jnp.float32)
    f2 = feat2.astype(jnp.float32)
    f1 = f1 / jnp.maximum(jnp.linalg.norm(f1, axis=-1, keepdims=True), 1e-12)
    f2 = f2 / jnp.maximum(jnp.linalg.norm(f2, axis=-1, keepdims=True), 1e-12)
    sim = f1 @ f2.T / temperature
    n = sim.shape[0]
    lse = jax.scipy.special.logsumexp(sim, axis=-1)
    return jnp.mean(lse - sim[jnp.arange(n), jnp.arange(n)])


def consistency_loss_pallas(feat1, feat2, temperature=0.5):
    """Fused Pallas kernel for the ConsistencyLoss hot path. Returns a scalar."""
    N, D = feat1.shape
    assert feat2.shape == (N, D)
    inv_temp = 1.0 / float(temperature)

    # Small / low-D / awkward-N problems: MXU nearly idle, per-step pipeline
    # overhead (~0.35us) dominates — plain XLA wins there.
    if N < 128 or D < 128 or N % 8 != 0:
        return _consistency_loss_xla(feat1, feat2, temperature)

    # Row tiles: keep >= 2 along the parallel axis so v7x's two TensorCores
    # both get work. Column tiles: prefer 512/256 (multiple of 256 fills the MXU).
    tr = _pick_tile(N, min(256, max(8, N // 2)))
    tc = _pick_tile(N, 512)

    # Byte-aware shrink so large-D tiles fit comfortably in scoped VMEM
    # (v7x: 64 MiB physical / 32 MiB scoped default; v5e scoped default 16 MiB).
    budget = _vmem_budget_bytes()
    while _vmem_bytes(tr, tc, D) > budget and tc > 128 and (tc // 2) in _POW2_TILES:
        tc //= 2
    while _vmem_bytes(tr, tc, D) > budget and tr > 64 and (tr // 2) in _POW2_TILES:
        tr //= 2

    # Pre-normalize feat2 ONCE outside the kernel (cheap O(N*D) pass); bf16
    # halves the column tiles' HBM traffic and feeds the MXU at native rate.
    f2 = feat2.astype(jnp.float32)
    f2n = (f2 * lax.rsqrt(jnp.maximum(jnp.sum(f2 * f2, axis=-1, keepdims=True), 1e-24))
           ).astype(jnp.bfloat16)
    f1 = feat1.astype(jnp.float32)

    # Static logsumexp shift is safe when exp(-2/temperature) cannot flush all
    # row terms to zero in f32 (temperature >= ~0.025).
    static_shift = (2.0 * inv_temp) <= 80.0

    kernel = functools.partial(_consistency_kernel, inv_temp=inv_temp,
                               static_shift=static_shift)

    scratch = [pltpu.VMEM((tr, D), jnp.bfloat16),   # cached normalized+scaled f1 row tile
               pltpu.VMEM((tr, 1), jnp.float32)]    # running row sum l_i
    if not static_shift:
        scratch.append(pltpu.VMEM((tr, 1), jnp.float32))  # running row max m_i

    per_row = pl.pallas_call(
        kernel,
        out_shape=jax.ShapeDtypeStruct((N, 1), jnp.float32),
        grid_spec=pltpu.PrefetchScalarGridSpec(
            num_scalar_prefetch=0,
            grid=(N // tr, N // tc),
            in_specs=[
                pl.BlockSpec((tr, D), lambda i, j: (i, 0)),  # feat1 row tile
                pl.BlockSpec((tc, D), lambda i, j: (j, 0)),  # normalized feat2 column tile
                pl.BlockSpec((tr, D), lambda i, j: (i, 0)),  # normalized feat2 row tile (diag)
            ],
            out_specs=pl.BlockSpec((tr, 1), lambda i, j: (i, 0)),
            scratch_shapes=scratch,
        ),
        compiler_params=pltpu.CompilerParams(
            dimension_semantics=("parallel", "arbitrary"),
            vmem_limit_bytes=32 << 20),
    )(f1, f2n, f2n)

    # Tiny final reduction (N values) left to XLA.
    return jnp.mean(per_row)


def consistency_loss(pred, target, aux_data=None, temperature=0.5):
    """Mirrors ConsistencyLoss.forward: returns 0.0 when no features given."""
    if aux_data is None or 'features' not in aux_data:
        return jnp.asarray(0.0, dtype=jnp.float32)
    feat1, feat2 = aux_data['features']
    return consistency_loss_pallas(feat1, feat2, temperature)


if __name__ == "__main__":
    key = jax.random.PRNGKey(0)
    k1, k2, k3, k4, k5, k6 = jax.random.split(key, 6)

    # Small shapes consistent with the module's forward (a batch of feature pairs).
    N, D = 8, 32
    pred = jax.random.normal(k1, (N, 4), dtype=jnp.float32)    # unused in loss (as in PyTorch)
    target = jax.random.normal(k2, (N, 4), dtype=jnp.float32)  # unused in loss
    feat1 = jax.random.normal(k3, (N, D), dtype=jnp.float32)
    feat2 = jax.random.normal(k4, (N, D), dtype=jnp.float32)

    aux_data = {'features': (feat1, feat2)}
    loss = consistency_loss(pred, target, aux_data, temperature=0.5)
    loss = jax.block_until_ready(loss)

    ref = _consistency_loss_xla(feat1, feat2, temperature=0.5)
    assert jnp.allclose(loss, ref, atol=1e-4, rtol=1e-4), (loss, ref)

    # Exercise the Pallas path (flash-style tiling, static-shift logsumexp,
    # bf16 MXU matmul, cached f1s scratch).
    N2, D2 = 1024, 128
    f1b = jax.random.normal(k5, (N2, D2), dtype=jnp.float32)
    f2b = jax.random.normal(k6, (N2, D2), dtype=jnp.float32)
    loss_big = jax.block_until_ready(consistency_loss_pallas(f1b, f2b, temperature=0.5))
    ref_big = _consistency_loss_xla(f1b, f2b, temperature=0.5)
    assert jnp.allclose(loss_big, ref_big, atol=2e-3, rtol=2e-3), (loss_big, ref_big)

    # Also exercise the "no features" branch.
    zero = jax.block_until_ready(consistency_loss(pred, target, None))
    assert zero == 0.0

    print("KERNEL_OK")
</pallas_src>

<mosaic_0001>
module attributes {stable_mosaic.version = 11 : i64} {
  func.func @_consistency_kernel(%arg0: i32, %arg1: i32, %arg2: memref<256x128xf32, #tpu.memory_space<vmem>>, %arg3: memref<512x128xbf16, #tpu.memory_space<vmem>>, %arg4: memref<256x128xbf16, #tpu.memory_space<vmem>>, %arg5: memref<256x1xf32, #tpu.memory_space<vmem>>, %arg6: memref<256x128xbf16, #tpu.memory_space<vmem>>, %arg7: memref<256x1xf32, #tpu.memory_space<vmem>>) attributes {dimension_semantics = [#tpu.dimension_semantics<parallel>, #tpu.dimension_semantics<arbitrary>], iteration_bounds = array<i64: 4, 2>, scalar_prefetch = 0 : i64, scratch_operands = 2 : i64, tpu.core_type = #tpu.core_type<tc>, window_params = [{transform_indices = @transform_0, window_bounds = array<i64: 256, 128>}, {transform_indices = @transform_1, window_bounds = array<i64: 512, 128>}, {transform_indices = @transform_2, window_bounds = array<i64: 256, 128>}, {transform_indices = @transform_3, window_bounds = array<i64: 256, 1>}]} {
    %c0_i32 = arith.constant 0 : i32
    %0 = arith.cmpi eq, %arg1, %c0_i32 : i32
    %1 = arith.extui %0 : i1 to i32
    %c0_i32_0 = arith.constant 0 : i32
    %2 = arith.cmpi ne, %1, %c0_i32_0 : i32
    scf.if %2 {
      %c0_11 = arith.constant 0 : index
      %c0_12 = arith.constant 0 : index
      %17 = vector.load %arg2[%c0_11, %c0_12] : memref<256x128xf32, #tpu.memory_space<vmem>>, vector<256x128xf32>
      %18 = arith.mulf %17, %17 : vector<256x128xf32>
      %cst_13 = arith.constant dense<0.000000e+00> : vector<256xf32>
      %19 = vector.multi_reduction <add>, %18, %cst_13 [1] : vector<256x128xf32> to vector<256xf32>
      %20 = vector.shape_cast %19 : vector<256xf32> to vector<256x1xf32>
      %cst_14 = arith.constant 1.000000e-24 : f32
      %21 = vector.broadcast %cst_14 : f32 to vector<256x1xf32>
      %22 = arith.maximumf %20, %21 : vector<256x1xf32>
      %23 = math.rsqrt %22 : vector<256x1xf32>
      %cst_15 = arith.constant 2.000000e+00 : f32
      %24 = vector.broadcast %cst_15 : f32 to vector<256x1xf32>
      %25 = arith.mulf %23, %24 : vector<256x1xf32>
      %26 = vector.broadcast %25 : vector<256x1xf32> to vector<256x128xf32>
      %27 = arith.mulf %17, %26 : vector<256x128xf32>
      %28 = arith.truncf %27 : vector<256x128xf32> to vector<256x128xbf16>
      %c0_16 = arith.constant 0 : index
      %c0_17 = arith.constant 0 : index
      %29 = vector.load %arg6[%c0_16, %c0_17] : memref<256x128xbf16, #tpu.memory_space<vmem>>, vector<256x128xbf16>
      tpu.vector_store %arg6[%c0_16, %c0_17], %28 {strides = array<i32>} : memref<256x128xbf16, #tpu.memory_space<vmem>>, vector<256x128xbf16>,
      %cst_18 = arith.constant 0.000000e+00 : f32
      %30 = vector.broadcast %cst_18 : f32 to vector<256x1xf32>
      %c0_19 = arith.constant 0 : index
      %c0_20 = arith.constant 0 : index
      %31 = vector.load %arg7[%c0_19, %c0_20] : memref<256x1xf32, #tpu.memory_space<vmem>>, vector<256x1xf32>
      tpu.vector_store %arg7[%c0_19, %c0_20], %30 {strides = array<i32>} : memref<256x1xf32, #tpu.memory_space<vmem>>, vector<256x1xf32>,
    } else {
    }
    %c0 = arith.constant 0 : index
    %c0_1 = arith.constant 0 : index
    %3 = vector.load %arg6[%c0, %c0_1] : memref<256x128xbf16, #tpu.memory_space<vmem>>, vector<256x128xbf16>
    %c0_2 = arith.constant 0 : index
    %c0_3 = arith.constant 0 : index
    %4 = vector.load %arg3[%c0_2, %c0_3] : memref<512x128xbf16, #tpu.memory_space<vmem>>, vector<512x128xbf16>
    %cst = arith.constant dense<0.000000e+00> : vector<256x512xf32>
    %5 = tpu.matmul %3, %4, %cst {dimension_numbers = #tpu.dot_dimension_numbers<[1], [1], [0], [0], [0, 0, 1, 0], [], []>} : vector<256x128xbf16>, vector<512x128xbf16>, vector<256x512xf32> -> vector<256x512xf32>
    %cst_4 = arith.constant 2.000000e+00 : f32
    %6 = vector.broadcast %cst_4 : f32 to vector<256x512xf32>
    %7 = arith.subf %5, %6 : vector<256x512xf32>
    %8 = math.exp %7 : vector<256x512xf32>
    %c0_5 = arith.constant 0 : index
    %c0_6 = arith.constant 0 : index
    %9 = vector.load %arg7[%c0_5, %c0_6] : memref<256x1xf32, #tpu.memory_space<vmem>>, vector<256x1xf32>
    %cst_7 = arith.constant dense<0.000000e+00> : vector<256xf32>
    %10 = vector.multi_reduction <add>, %8, %cst_7 [1] : vector<256x512xf32> to vector<256xf32>
    %11 = vector.shape_cast %10 : vector<256xf32> to vector<256x1xf32>
    %12 = arith.addf %9, %11 : vector<256x1xf32>
    %c0_8 = arith.constant 0 : index
    %c0_9 = arith.constant 0 : index
    %13 = vector.load %arg7[%c0_8, %c0_9] : memref<256x1xf32, #tpu.memory_space<vmem>>, vector<256x1xf32>
    tpu.vector_store %arg7[%c0_8, %c0_9], %12 {strides = array<i32>} : memref<256x1xf32, #tpu.memory_space<vmem>>, vector<256x1xf32>,
    %c1_i32 = arith.constant 1 : i32
    %14 = arith.cmpi eq, %arg1, %c1_i32 : i32
    %15 = arith.extui %14 : i1 to i32
    %c0_i32_10 = arith.constant 0 : i32
    %16 = arith.cmpi ne, %15, %c0_i32_10 : i32
    scf.if %16 {
      %c0_11 = arith.constant 0 : index
      %c0_12 = arith.constant 0 : index
      %17 = vector.load %arg6[%c0_11, %c0_12] : memref<256x128xbf16, #tpu.memory_space<vmem>>, vector<256x128xbf16>
      %18 = arith.extf %17 : vector<256x128xbf16> to vector<256x128xf32>
      %c0_13 = arith.constant 0 : index
      %c0_14 = arith.constant 0 : index
      %19 = vector.load %arg4[%c0_13, %c0_14] : memref<256x128xbf16, #tpu.memory_space<vmem>>, vector<256x128xbf16>
      %20 = arith.extf %19 : vector<256x128xbf16> to vector<256x128xf32>
      %21 = arith.mulf %18, %20 : vector<256x128xf32>
      %cst_15 = arith.constant dense<0.000000e+00> : vector<256xf32>
      %22 = vector.multi_reduction <add>, %21, %cst_15 [1] : vector<256x128xf32> to vector<256xf32>
      %23 = vector.shape_cast %22 : vector<256xf32> to vector<256x1xf32>
      %c0_16 = arith.constant 0 : index
      %c0_17 = arith.constant 0 : index
      %24 = vector.load %arg7[%c0_16, %c0_17] : memref<256x1xf32, #tpu.memory_space<vmem>>, vector<256x1xf32>
      %25 = math.log %24 : vector<256x1xf32>
      %cst_18 = arith.constant 2.000000e+00 : f32
      %26 = vector.broadcast %cst_18 : f32 to vector<256x1xf32>
      %27 = arith.addf %26, %25 : vector<256x1xf32>
      %28 = arith.subf %27, %23 : vector<256x1xf32>
      %c0_19 = arith.constant 0 : index
      %c0_20 = arith.constant 0 : index
      %29 = vector.load %arg5[%c0_19, %c0_20] : memref<256x1xf32, #tpu.memory_space<vmem>>, vector<256x1xf32>
      tpu.vector_store %arg5[%c0_19, %c0_20], %28 {strides = array<i32>} : memref<256x1xf32, #tpu.memory_space<vmem>>, vector<256x1xf32>,
    } else {
    }
    return
  }
  func.func @transform_0(%arg0: i32, %arg1: i32) -> (i32, i32) {
    %c0_i32 = arith.constant 0 : i32
    %c0_i32_0 = arith.constant 0 : i32
    return %arg0, %c0_i32 : i32, i32
  }
  func.func @transform_1(%arg0: i32, %arg1: i32) -> (i32, i32) {
    %c0_i32 = arith.constant 0 : i32
    %c0_i32_0 = arith.constant 0 : i32
    return %arg1, %c0_i32 : i32, i32
  }
  func.func @transform_2(%arg0: i32, %arg1: i32) -> (i32, i32) {
    %c0_i32 = arith.constant 0 : i32
    %c0_i32_0 = arith.constant 0 : i32
    return %arg0, %c0_i32 : i32, i32
  }
  func.func @transform_3(%arg0: i32, %arg1: i32) -> (i32, i32) {
    %c0_i32 = arith.constant 0 : i32
    %c0_i32_0 = arith.constant 0 : i32
    return %arg0, %c0_i32 : i32, i32
  }
}

</mosaic_0001>

<bundles_post_ra>
// kernel: tpu_custom_call.1
= control target key start
LH: loop header
LB: loop body
LE: loop exit
PB: predicated region body
PF: predicated region fallthrough
CT: control target
= control target key end

     0   :  { %s4224_s0 = inlined_call_operand.hbm [shape: f32[1024,128], index: 0, kind: input, shape index: {}]   ;;  %s4225_s1 = inlined_call_operand.hbm [shape: bf16[1024,128], index: 1, kind: input, shape index: {}]   ;;  %s4226_s2 = inlined_call_operand.hbm [shape: bf16[1024,128], index: 2, kind: input, shape index: {}]   ;;  %s4227_s3 = inlined_call_operand.vmem [shape: f32[1024,1], index: 3, kind: output, shape index: {}]  }
   0x1   :  { %4239 = sst [smem:[#allocation15_spill]] %s4224_s0 }
   0x2   :  { %4240 = sst [smem:[#allocation16_spill]] %s4225_s1 }
   0x3   :  { %8 = vsyncpa [#allocation5], 0 }
   0x4   :  { %10 = vsyncpa [#allocation5 + $0x1], 0 }
   0x5   :  { %11 = vsyncpa [#allocation7], 0 }
   0x6   :  { %13 = vsyncpa [#allocation7 + $0x1], 0  ;;  %s3540_s12 = smov 0   ;;  %s3542_s13 = smov 0  }
   0x7   :  { %s3544_s14 = smov 0   ;;  %s3546_s15 = smov 0  }
   0x8   :  { %s3548_s16 = smov 0   ;;  %s3550_s17 = smov 0  }
   0x9   :  { %s3552_s18 = smov 0   ;;  %s3554_s19 = smov 0  }
   0xa   :  { %s3556_s20 = smov 0   ;;  %s3558_s21 = smov 0  }
   0xb   :  { %s3560_s22 = smov 0  }
   0xc LB: > { %4241 = sst [smem:[#allocation12_spill]] %s3502_s20  ;;  %s4232_s23 = sadd.s32 4294967295, %s3510_s22   ;;  %s3510_s22 = sphi %s3560_s22, %s19_s22   ;;  %s3506_s21 = sphi %s3558_s21, %s4273_s21   ;;  %s3502_s20 = sphi %s3556_s20, %s4264_s20   ;;  %s3498_s19 = sphi %s3554_s19, %s4272_s19   ;;  %s3494_s18 = sphi %s3552_s18, %s4263_s18   ;;  %s3490_s17 = sphi %s3550_s17, %s4271_s17   ;;  %s3486_s16 = sphi %s3548_s16, %s4270_s16   ;;  %s3482_s15 = sphi %s3546_s15, %s4269_s15   ;;  %s3478_s14 = sphi %s3544_s14, %s4268_s14   ;;  %s3474_s13 = sphi %s3542_s13, %s4267_s13   ;;  %s3470_s12 = sphi %s3540_s12, %s4266_s12  }
   0xd   : > { %s28_s24 = sadd.s32 1, %s3502_s20  ;;  %p4229_p1 = scmp.eq.s32.totalorder %s3510_s22, 0 }
   0xe   : > { %p3595_p0 = scmp.ge.s32.totalorder %s28_s24, 2  ;;  %p3602_p2 = scmp.eq.s32.totalorder %s4232_s23, 0 }
   0xf   : > { %s64_s27 = sadd.s32 1, %s3478_s14  ;;  %p71_p3 = scmp.ne.s32.totalorder %s3478_s14, %s3474_s13 }
  0x10   : > { %s4243_s26 = scalar_select %p3602_p2, 1, 0 }
  0x11   : > { %s4275_s24 = smov (%p3595_p0, %s28_s24), 0  ;;  %p77_p4 = scmp.ne.s32.totalorder %s3474_s13, %s3470_s12 }
  0x12   : > { %4244 = sst [smem:[#allocation13_spill]] %s4275_s24  ;;  %s61_s28 = ssub.s32 %s3502_s20, %s4275_s24 }
  0x13   : > { %p62_p5 = scmp.eq.s32.totalorder %s61_s28, 0  ;;  %p73_p6 = por %p71_p3, %p4229_p1 }
  0x14   : > { %p3620_p7 = por %p77_p4, %p3602_p2  ;;  %p4228_p8 = scmp.lt.s32.totalorder %s3510_s22, 8 }
  0x15   : > { %s3626_s30 = scalar_select %p62_p5, %s3478_s14, %s64_s27  }
  0x16   : > { %s4245_s29 = scalar_select %p3620_p7, 1, 0 }
  0x17   : > { %s174_s4 = sand.u32 1, %s3510_s22   ;;  %s176_s5 = sand.u32 1, %s3478_s14  }
  0x18   : > { %s2442_s6 = sshll.u32 %s176_s5, 8  ;;  %s2619_s7 = sshll.u32 %s3502_s20, 12 }
  0x19   : > { %s4246_s1 = sld [smem:[#allocation16_spill]]  ;;  %s178_s11 = scalar_lea.vmem [#allocation6], %s2442_s6 }
  0x1a   : > { %s185_s12 = sshll.u32 %s178_s11, 4  ;;  %p3640_p9 = pnand %p4228_p8, %p73_p6  ;;  %s3636_s12 = int_to_ptr.vmem [resolvable:$true] %s185_s12 }
  0x1b   : > { %s3645_s28 = scalar_lea.sflag [#allocation7], %s174_s4 }
  0x1c   : > { %p3324_p12 = pneg %p3640_p9 }
  0x1f   : > { %s3634_s10 = scalar_lea.hbm %s4246_s1, %s2619_s7  ;;  %s3327_s8 = scalar_lea.hbm %s4246_s1, 8192 }
  0x20   : > { %s3322_s5 = scalar_lea.hbm %s3634_s10, 4096  ;;  %p3328_p4 = scmp.lt.u32.totalorder %s3634_s10, %s4246_s1 }
  0x21   : > { %p3323_p11 = scmp.ne.s32.totalorder %s3634_s10, %s3322_s5  ;;  %p3329_p5 = scmp.lt.u32.totalorder %s3327_s8, %s3322_s5 }
  0x22   : > { %p3331_p8 = scmp.lt.u32.totalorder %s3322_s5, %s3634_s10 }
  0x23   : > { %p3325_p13 = pnand %p3324_p12, %p3323_p11  ;;  %p3330_p6 = por %p3329_p5, %p3328_p4 }
  0x25   : > { %p3326_p3 = pneg %p3325_p13  ;;  %p3332_p1 = por %p3331_p8, %p3330_p6 }
  0x27   : > { %p3333_p10 = pnand %p3332_p1, %p3326_p3 }
  0x29   : > { %3336 = shalt.err (!%p3333_p10)
}
  0x2a   : > { %s3337_s4 = scalar_lea.vmem %s3636_s12, 4096  ;;  %s3512_s6 = smov [#allocation6]  }
  0x2b   : > { %p3338_p11 = scmp.ne.s32.totalorder %s3636_s12, %s3337_s4  ;;  %s3342_s7 = sshll.u32 %s3512_s6, 4  ;;  %s3343_s7 = int_to_ptr.vmem [resolvable:$false] %s3342_s7 }
  0x2c   : > { %s3344_s9 = scalar_lea.vmem %s3343_s7, 8192  ;;  %p3345_p2 = scmp.lt.s32.totalorder %s3636_s12, %s3343_s7 }
  0x2d   : > { %p3340_p13 = pnand %p3338_p11, %p3324_p12  ;;  %p3346_p4 = scmp.lt.s32.totalorder %s3344_s9, %s3337_s4 }
  0x2f   : > { %p3341_p7 = pneg %p3340_p13  ;;  %p3347_p5 = por %p3346_p4, %p3345_p2 }
  0x31   : > { %p3348_p8 = pnand %p3347_p5, %p3341_p7 }
  0x33   : > { %3351 = shalt.err (!%p3348_p8)
}
  0x34   : > { %s4233_s5 = smov 64   ;;  %s4234_s8 = smov 4  }
  0x35   : > { %2808 = dma.hbm_to_vmem [thread:$0]  (!%p3640_p9), %s3634_s10, 4096, %s3636_s12, %s3645_s28, %s4233_s5, %s4233_s5, %s4234_s8  }
  0x36   : > { %p214_p1 = scmp.lt.s32.totalorder %s3510_s22, 9  ;;  %p4248_p2 = scmp.ge.s32.totalorder %s3510_s22, 1 }
  0x37   : > { %s31_s4 = sadd.s32 1, %s3506_s21  ;;  %s38_s6 = sadd.s32 1, %s3490_s17 }
  0x38   : > { %p3679_p7 = pnand %p4248_p2, %p214_p1  ;;  %s4277_s4 = smov (!%p3595_p0, %s31_s4), %s3506_s21 }
  0x39   : > { %p45_p10 = scmp.ne.s32.totalorder %s3490_s17, %s3486_s16  ;;  %p51_p12 = scmp.ne.s32.totalorder %s3486_s16, %s3482_s15 }
  0x3a   : > { %p33_p3 = scmp.ge.s32.totalorder %s4277_s4, 4  ;;  %s3693_s27 = sand.u32 1, %s3490_s17  }
  0x3b   : > { %p4250_p6 = scmp.eq.s32.totalorder %s3510_s22, 0  ;;  %p4251_p11 = scmp.ne.s32.totalorder %s4243_s26, 0 }
  0x3c   : > { %s4279_s4 = smov (%p33_p3, %s4277_s4), 0  ;;  %s2439_s25 = sshll.u32 %s3693_s27, 8 }
  0x3d   : > { %p47_p9 = por %p4250_p6, %p45_p10  ;;  %p3699_p13 = por %p4251_p11, %p51_p12 }
  0x3e   : > { %4253 = sst [smem:[#allocation14_spill]] %s4279_s4  ;;  %s35_s12 = ssub.s32 %s3506_s21, %s4279_s4 }
  0x3f   : > { %s4252_s10 = scalar_select %p3699_p13, 1, 0 }
  0x40   : > { %p36_p0 = scmp.eq.s32.totalorder %s35_s12, 0  ;;  %s2618_s15 = sshll.u32 %s3506_s21, 12 }
  0x41   : > { %s4254_s0 = sld [smem:[#allocation15_spill]]  ;;  %s157_s26 = scalar_lea.vmem [#allocation4], %s2439_s25 }
  0x42   : > { %s164_s5 = sshll.u32 %s157_s26, 4  ;;  %p4255_p4 = scmp.lt.s32.totalorder %s3510_s22, 8  ;;  %s3717_s5 = int_to_ptr.vmem [resolvable:$true] %s164_s5 }
  0x43   : > { %s3715_s8 = scalar_select %p36_p0, %s3490_s17, %s38_s6  }
  0x44   : > { %p3721_p5 = pnand %p4255_p4, %p47_p9 }
  0x46   : > { %p3354_p1 = pneg %p3721_p5 }
  0x47   : > { %s3712_s23 = scalar_lea.hbm %s4254_s0, %s2618_s15  ;;  %s154_s15 = scalar_lea.sflag [#allocation5], %s3693_s27 }
  0x48   : > { %s3352_s7 = scalar_lea.hbm %s3712_s23, 4096  ;;  %s3357_s9 = scalar_lea.hbm %s4254_s0, 16384 }
  0x49   : > { %p3353_p8 = scmp.ne.s32.totalorder %s3712_s23, %s3352_s7  ;;  %p3358_p12 = scmp.lt.u32.totalorder %s3712_s23, %s4254_s0 }
  0x4a   : > { %p3359_p3 = scmp.lt.u32.totalorder %s3357_s9, %s3352_s7  ;;  %p3361_p9 = scmp.lt.u32.totalorder %s3352_s7, %s3712_s23 }
  0x4b   : > { %p3355_p2 = pnand %p3354_p1, %p3353_p8 }
  0x4c   : > { %p3360_p6 = por %p3359_p3, %p3358_p12 }
  0x4d   : > { %p3356_p10 = pneg %p3355_p2 }
  0x4e   : > { %p3362_p11 = por %p3361_p9, %p3360_p6 }
  0x50   : > { %p3363_p0 = pnand %p3362_p11, %p3356_p10 }
  0x52   : > { %3366 = shalt.err (!%p3363_p0)
}
  0x53   : > { %s3367_s12 = scalar_lea.vmem %s3717_s5, 4096  ;;  %s3515_s6 = smov [#allocation4]  }
  0x54   : > { %p3368_p4 = scmp.ne.s32.totalorder %s3717_s5, %s3367_s12  ;;  %s3372_s25 = sshll.u32 %s3515_s6, 4  ;;  %s3373_s25 = int_to_ptr.vmem [resolvable:$false] %s3372_s25 }
  0x55   : > { %s3374_s4 = scalar_lea.vmem %s3373_s25, 8192  ;;  %p3375_p13 = scmp.lt.s32.totalorder %s3717_s5, %s3373_s25 }
  0x56   : > { %p3370_p8 = pnand %p3368_p4, %p3354_p1  ;;  %p3376_p12 = scmp.lt.s32.totalorder %s3374_s4, %s3367_s12 }
  0x58   : > { %p3371_p2 = pneg %p3370_p8  ;;  %p3377_p3 = por %p3376_p12, %p3375_p13 }
  0x5a   : > { %p3378_p6 = pnand %p3377_p3, %p3371_p2 }
  0x5c   : > { %3381 = shalt.err (!%p3378_p6)
}
  0x5d   : > { %s3516_s7 = smov 128   ;;  %s3517_s9 = smov 8  }
  0x5e   : > { %2805 = dma.hbm_to_vmem [thread:$0]  (!%p3721_p5), %s3712_s23, 4096, %s3717_s5, %s154_s15, %s3516_s7, %s3516_s7, %s3517_s9  }
  0x5f   : > { %s2620_s26 = sshll.u32 %s3506_s21, 11  ;;  %s4257_s25 = sshll.u32 %s3693_s27, 7 }
  0x60   : > { %s3758_s12 = scalar_lea.hbm %s4226_s2, %s2620_s26  ;;  %s199_s4 = scalar_lea.vmem [#allocation8], %s4257_s25 }
  0x61   : > { %s206_s24 = sshll.u32 %s199_s4, 4  ;;  %s3382_s20 = scalar_lea.hbm %s3758_s12, 2048  ;;  %s3762_s24 = int_to_ptr.vmem [resolvable:$true] %s206_s24 }
  0x62   : > { %p3383_p13 = scmp.ne.s32.totalorder %s3758_s12, %s3382_s20  ;;  %s3387_s0 = scalar_lea.hbm %s4226_s2, 8192 }
  0x63   : > { %p3388_p11 = scmp.lt.u32.totalorder %s3758_s12, %s4226_s2  ;;  %p3389_p0 = scmp.lt.u32.totalorder %s3387_s0, %s3382_s20 }
  0x64   : > { %p3385_p10 = pnand %p3383_p13, %p3354_p1  ;;  %p3391_p8 = scmp.lt.u32.totalorder %s3382_s20, %s3758_s12 }
  0x65   : > { %p3390_p4 = por %p3389_p0, %p3388_p11 }
  0x66   : > { %p3386_p9 = pneg %p3385_p10 }
  0x67   : > { %p3392_p2 = por %p3391_p8, %p3390_p4 }
  0x69   : > { %p3393_p12 = pnand %p3392_p2, %p3386_p9 }
  0x6b   : > { %3396 = shalt.err (!%p3393_p12)
}
  0x6c   : > { %s3397_s7 = scalar_lea.vmem %s3762_s24, 2048  ;;  %s3518_s9 = smov [#allocation8]  }
  0x6d   : > { %p3398_p3 = scmp.ne.s32.totalorder %s3762_s24, %s3397_s7  ;;  %s3402_s26 = sshll.u32 %s3518_s9, 4  ;;  %s3403_s26 = int_to_ptr.vmem [resolvable:$false] %s3402_s26 }
  0x6e   : > { %s3404_s6 = scalar_lea.vmem %s3403_s26, 4096  ;;  %p3405_p10 = scmp.lt.s32.totalorder %s3762_s24, %s3403_s26 }
  0x6f   : > { %p3400_p6 = pnand %p3398_p3, %p3354_p1  ;;  %p3406_p11 = scmp.lt.s32.totalorder %s3404_s6, %s3397_s7 }
  0x71   : > { %p3401_p13 = pneg %p3400_p6  ;;  %p3407_p0 = por %p3406_p11, %p3405_p10 }
  0x73   : > { %p3408_p4 = pnand %p3407_p0, %p3401_p13 }
  0x75   : > { %3411 = shalt.err (!%p3408_p4)
}
  0x76   : > { %s4258_s20 = smov 4   ;;  %s4259_s25 = smov 64  }
  0x77   : > { %2811 = dma.hbm_to_vmem [thread:$0]  (!%p3721_p5), %s3758_s12, 2048, %s3762_s24, %s3645_s28, %s4259_s25, %s4259_s25, %s4258_s20  }
  0x78   : > { %218 = sbr.rel (%p3679_p7) target bundleno = 1112 (0x458), region = 32  ;;  %s220_s4 = sand.u32 (!%p3679_p7), 1, %s3486_s16  }
  0x79   : > { %s2449_s23 = sshll.u32 (!%p3679_p7), %s220_s4, 8  ;;  %s221_s5 = scalar_lea.sflag (!%p3679_p7), [#allocation5], %s220_s4 }
  0x7a   : > { %s3794_s0 = scalar_lea.vmem (!%p3679_p7), [#allocation4], %s2449_s23  ;;  %p4260_p1 = scmp.ne.s32.totalorder (!%p3679_p7), %s4252_s10, 0 }
  0x7f   : > { %3457 = dma.done.wait (%p4260_p1), %s221_s5, 4096  }
  0x80   : > { %3459 = vsyncadd (%p4260_p1), %s221_s5, 4294963200  ;;  %s4261_s1 = sadd.s32 4294967295, %s3510_s22   ;;  %s231_s28 = sand.u32 1, %s3474_s13  }
  0x81   : > { %s229_s24 = sand.u32 1, %s4261_s1   ;;  %s2450_s11 = sshll.u32 %s231_s28, 8 }
  0x82   : > { %s230_s12 = scalar_lea.sflag [#allocation7], %s229_s24  ;;  %s3803_s15 = scalar_lea.vmem [#allocation6], %s2450_s11 }
  0x83   : > { %p4262_p7 = scmp.ne.s32.totalorder %s4245_s29, 0 }
  0x85   : > { %3461 = dma.done.wait (%p4262_p7), %s230_s12, 4096  }
  0x86   : > { %3463 = vsyncadd (%p4262_p7), %s230_s12, 4294963200  ;;  %s2451_s27 = sshll.u32 %s220_s4, 7 }
  0x87   : > { %s3809_s7 = scalar_lea.vmem [#allocation8], %s2451_s27 }
  0x88   : > { %3465 = dma.done.wait (%p4260_p1), %s230_s12, 2048  }
  0x89   : > { %3467 = vsyncadd (%p4260_p1), %s230_s12, 4294965248  ;;  %s2452_s9 = sshll.u32 %s3498_s19, 5  ;;  %p2454_p9 = scmp.ne.s32.totalorder %s3494_s18, 0 }
  0x8a   : > { %p279_p5 = scmp.lt.s32.totalorder %s2452_s9, 127  ;;  %v3823_v0 = vld [vmem:[%s3794_s0 + $0x10] sm:$0xff] (!%p2454_p9)  ;;  %v3826_v1 = vld [vmem:[%s3794_s0] sm:$0xff] (!%p2454_p9)  ;;  %v3829_v2 = vld [vmem:[%s3794_s0 + $0x18] sm:$0xff] (!%p2454_p9)  ;;  %vm577_vm0 = vcmask (!%p2454_p9), 7168  }
  0x8b   : > { %288 = sbr.rel (%p2454_p9) target bundleno = 364 (0x16c), region = 48  ;;  %v323_v3 = vmul.f32 (!%p2454_p9), %v3823_v0, %v3823_v0  ;;  %v321_v4 = vmul.f32 (!%p2454_p9), %v3826_v1, %v3826_v1  ;;  %v3836_v5 = vld [vmem:[%s3794_s0 + $0x8] sm:$0xff] (!%p2454_p9)  ;;  %v324_v6 = vmul.f32 (!%p2454_p9), %v3829_v2, %v3829_v2  ;;  %v3846_v9 = vld [vmem:[%s3794_s0 + $0x20] sm:$0xff] (!%p2454_p9)  ;;  %v3853_v12 = vld [vmem:[%s3794_s0 + $0x38] sm:$0xff] (!%p2454_p9) }
  0x8c   : > { %s4281_s9 = smov (!%p279_p5, %s2452_s9), 127  ;;  %v322_v7 = vmul.f32 (!%p2454_p9), %v3836_v5, %v3836_v5  ;;  %v3843_v8 = vld [vmem:[%s3794_s0 + $0x28] sm:$0xff] (!%p2454_p9)  ;;  %v325_v11 = vmul.f32 (!%p2454_p9), %v3846_v9, %v3846_v9  ;;  %v3856_v13 = vld [vmem:[%s3794_s0 + $0x30] sm:$0xff] (!%p2454_p9)  ;;  %v328_v14 = vmul.f32 (!%p2454_p9), %v3853_v12, %v3853_v12  ;;  %v3866_v17 = vld [vmem:[%s3794_s0 + $0x40] sm:$0xff] (!%p2454_p9) }
  0x8d   : > { %s2453_s26 = sshll.u32 %s4281_s9, 3  ;;  %357 = vadd.xlane.f32.xlu1 (!%p2454_p9), %v323_v3  ;;  %353 = vadd.xlane.f32.xlu0 (!%p2454_p9), %v321_v4  ;;  %v326_v10 = vmul.f32 (!%p2454_p9), %v3843_v8, %v3843_v8  ;;  %v327_v15 = vmul.f32 (!%p2454_p9), %v3856_v13, %v3856_v13  ;;  %v3863_v16 = vld [vmem:[%s3794_s0 + $0x48] sm:$0xff] (!%p2454_p9)  ;;  %v329_v19 = vmul.f32 (!%p2454_p9), %v3866_v17, %v3866_v17  ;;  %v3873_v20 = vld [vmem:[%s3794_s0 + $0x58] sm:$0xff] (!%p2454_p9)  ;;  %v3876_v21 = vld [vmem:[%s3794_s0 + $0x50] sm:$0xff] (!%p2454_p9)  ;;  %v3519_v3 = vmov (!%p2454_p9), 0.0  }
  0x8e   : > { %s3819_s25 = scalar_lea.vmem %s4227_s3, %s2453_s26  ;;  %v330_v18 = vmul.f32 (!%p2454_p9), %v3863_v16, %v3863_v16  ;;  %v332_v22 = vmul.f32 (!%p2454_p9), %v3873_v20, %v3873_v20  ;;  %v331_v23 = vmul.f32 (!%p2454_p9), %v3876_v21, %v3876_v21  ;;  %v3883_v24 = vld [vmem:[%s3794_s0 + $0x68] sm:$0xff] (!%p2454_p9)  ;;  %v3886_v25 = vld [vmem:[%s3794_s0 + $0x60] sm:$0xff] (!%p2454_p9)  ;;  %v3893_v28 = vld [vmem:[%s3794_s0 + $0x78] sm:$0xff] (!%p2454_p9)  ;;  %578 = vst.msk [vmem:[#allocation3] sm:$0xff] (!%p2454_p9), %vm577_vm0, %v3519_v3 }
  0x8f   : > { %v334_v26 = vmul.f32 (!%p2454_p9), %v3883_v24, %v3883_v24  ;;  %v333_v27 = vmul.f32 (!%p2454_p9), %v3886_v25, %v3886_v25  ;;  %v3896_v29 = vld [vmem:[%s3794_s0 + $0x70] sm:$0xff] (!%p2454_p9)  ;;  %v336_v30 = vmul.f32 (!%p2454_p9), %v3893_v28, %v3893_v28  ;;  %v3903_v32 = vld [vmem:[%s3794_s0 + $0x88] sm:$0xff] (!%p2454_p9)  ;;  %v3906_v33 = vld [vmem:[%s3794_s0 + $0x80] sm:$0xff] (!%p2454_p9)  ;;  %579 = vst.msk [vmem:[#allocation3 + $0x8] sm:$0xff] (!%p2454_p9), %vm577_vm0, %v3519_v3 }
  0x90   : > { %v335_v31 = vmul.f32 (!%p2454_p9), %v3896_v29, %v3896_v29  ;;  %v338_v34 = vmul.f32 (!%p2454_p9), %v3903_v32, %v3903_v32  ;;  %v337_v35 = vmul.f32 (!%p2454_p9), %v3906_v33, %v3906_v33  ;;  %v3913_v36 = vld [vmem:[%s3794_s0 + $0x98] sm:$0xff] (!%p2454_p9)  ;;  %v3916_v37 = vld [vmem:[%s3794_s0 + $0x90] sm:$0xff] (!%p2454_p9)  ;;  %v3923_v40 = vld [vmem:[%s3794_s0 + $0xa8] sm:$0xff] (!%p2454_p9)  ;;  %580 = vst.msk [vmem:[#allocation3 + $0x10] sm:$0xff] (!%p2454_p9), %vm577_vm0, %v3519_v3 }
  0x91   : > { %359 = vadd.xlane.f32.xlu1 (!%p2454_p9), %v324_v6  ;;  %355 = vadd.xlane.f32.xlu0 (!%p2454_p9), %v322_v7  ;;  %v340_v38 = vmul.f32 (!%p2454_p9), %v3913_v36, %v3913_v36  ;;  %v339_v39 = vmul.f32 (!%p2454_p9), %v3916_v37, %v3916_v37  ;;  %v3926_v41 = vld [vmem:[%s3794_s0 + $0xa0] sm:$0xff] (!%p2454_p9)  ;;  %v342_v42 = vmul.f32 (!%p2454_p9), %v3923_v40, %v3923_v40  ;;  %v3933_v44 = vld [vmem:[%s3794_s0 + $0xb8] sm:$0xff] (!%p2454_p9)  ;;  %v3936_v45 = vld [vmem:[%s3794_s0 + $0xb0] sm:$0xff] (!%p2454_p9) }
  0x92   : > { %v341_v43 = vmul.f32 %v3926_v41, %v3926_v41  ;;  %v344_v46 = vmul.f32 %v3933_v44, %v3933_v44  ;;  %v343_v47 = vmul.f32 %v3936_v45, %v3936_v45  ;;  %v3943_v48 = vld [vmem:[%s3794_s0 + $0xc8] sm:$0xff]  ;;  %v3946_v49 = vld [vmem:[%s3794_s0 + $0xc0] sm:$0xff]  ;;  %v3953_v52 = vld [vmem:[%s3794_s0 + $0xd8] sm:$0xff]  ;;  %581 = vst.msk [vmem:[#allocation3 + $0x18] sm:$0xff] %vm577_vm0, %v3519_v3 }
  0x93   : > { %v346_v50 = vmul.f32 %v3943_v48, %v3943_v48  ;;  %v345_v51 = vmul.f32 %v3946_v49, %v3946_v49  ;;  %v3956_v53 = vld [vmem:[%s3794_s0 + $0xd0] sm:$0xff]  ;;  %v348_v54 = vmul.f32 %v3953_v52, %v3953_v52  ;;  %v3963_v56 = vld [vmem:[%s3794_s0 + $0xe8] sm:$0xff]  ;;  %v3966_v57 = vld [vmem:[%s3794_s0 + $0xe0] sm:$0xff]  ;;  %582 = vst.msk [vmem:[#allocation3 + $0x20] sm:$0xff] %vm577_vm0, %v3519_v3 }
  0x94   : > { %v347_v55 = vmul.f32 %v3956_v53, %v3956_v53  ;;  %v350_v58 = vmul.f32 %v3963_v56, %v3963_v56  ;;  %v349_v59 = vmul.f32 %v3966_v57, %v3966_v57  ;;  %v3973_v60 = vld [vmem:[%s3794_s0 + $0xf8] sm:$0xff]  ;;  %v3976_v61 = vld [vmem:[%s3794_s0 + $0xf0] sm:$0xff]  ;;  %583 = vst.msk [vmem:[#allocation3 + $0x28] sm:$0xff] %vm577_vm0, %v3519_v3  ;;  %584 = vst.msk [vmem:[#allocation3 + $0x30] sm:$0xff] %vm577_vm0, %v3519_v3 }
  0x95   : > { %363 = vadd.xlane.f32.xlu1 %v326_v10  ;;  %361 = vadd.xlane.f32.xlu0 %v325_v11  ;;  %v352_v62 = vmul.f32 %v3973_v60, %v3973_v60  ;;  %v351_v63 = vmul.f32 %v3976_v61, %v3976_v61  ;;  %585 = vst.msk [vmem:[#allocation3 + $0x38] sm:$0xff] %vm577_vm0, %v3519_v3  ;;  %586 = vst.msk [vmem:[#allocation3 + $0x40] sm:$0xff] %vm577_vm0, %v3519_v3 }
  0x96   : > { %587 = vst.msk [vmem:[#allocation3 + $0x48] sm:$0xff] %vm577_vm0, %v3519_v3  ;;  %588 = vst.msk [vmem:[#allocation3 + $0x50] sm:$0xff] %vm577_vm0, %v3519_v3 }
  0x97   : > { %589 = vst.msk [vmem:[#allocation3 + $0x58] sm:$0xff] %vm577_vm0, %v3519_v3  ;;  %590 = vst.msk [vmem:[#allocation3 + $0x60] sm:$0xff] %vm577_vm0, %v3519_v3 }
  0x98   : > { %591 = vst.msk [vmem:[#allocation3 + $0x68] sm:$0xff] %vm577_vm0, %v3519_v3  ;;  %592 = vst.msk [vmem:[#allocation3 + $0x70] sm:$0xff] %vm577_vm0, %v3519_v3 }
  0x99   : > { %367 = vadd.xlane.f32.xlu1 %v328_v14  ;;  %365 = vadd.xlane.f32.xlu0 %v327_v15  ;;  %593 = vst.msk [vmem:[#allocation3 + $0x78] sm:$0xff] %vm577_vm0, %v3519_v3  ;;  %594 = vst.msk [vmem:[#allocation3 + $0x80] sm:$0xff] %vm577_vm0, %v3519_v3 }
  0x9a   : > { %595 = vst.msk [vmem:[#allocation3 + $0x88] sm:$0xff] %vm577_vm0, %v3519_v3  ;;  %596 = vst.msk [vmem:[#allocation3 + $0x90] sm:$0xff] %vm577_vm0, %v3519_v3 }
  0x9b   : > { %597 = vst.msk [vmem:[#allocation3 + $0x98] sm:$0xff] %vm577_vm0, %v3519_v3  ;;  %598 = vst.msk [vmem:[#allocation3 + $0xa0] sm:$0xff] %vm577_vm0, %v3519_v3 }
  0x9c   : > { %599 = vst.msk [vmem:[#allocation3 + $0xa8] sm:$0xff] %vm577_vm0, %v3519_v3  ;;  %600 = vst.msk [vmem:[#allocation3 + $0xb0] sm:$0xff] %vm577_vm0, %v3519_v3 }
  0x9d   : > { %371 = vadd.xlane.f32.xlu1 %v330_v18  ;;  %369 = vadd.xlane.f32.xlu0 %v329_v19  ;;  %601 = vst.msk [vmem:[#allocation3 + $0xb8] sm:$0xff] %vm577_vm0, %v3519_v3  ;;  %602 = vst.msk [vmem:[#allocation3 + $0xc0] sm:$0xff] %vm577_vm0, %v3519_v3 }
  0x9e   : > { %603 = vst.msk [vmem:[#allocation3 + $0xc8] sm:$0xff] %vm577_vm0, %v3519_v3  ;;  %604 = vst.msk [vmem:[#allocation3 + $0xd0] sm:$0xff] %vm577_vm0, %v3519_v3 }
  0x9f   : > { %605 = vst.msk [vmem:[#allocation3 + $0xd8] sm:$0xff] %vm577_vm0, %v3519_v3  ;;  %606 = vst.msk [vmem:[#allocation3 + $0xe0] sm:$0xff] %vm577_vm0, %v3519_v3 }
  0xa0   : > { %607 = vst.msk [vmem:[#allocation3 + $0xe8] sm:$0xff] %vm577_vm0, %v3519_v3  ;;  %608 = vst.msk [vmem:[#allocation3 + $0xf0] sm:$0xff] %vm577_vm0, %v3519_v3 }
  0xa1   : > { %375 = vadd.xlane.f32.xlu1 %v332_v22  ;;  %373 = vadd.xlane.f32.xlu0 %v331_v23  ;;  %609 = vst.msk [vmem:[#allocation3 + $0xf8] sm:$0xff] %vm577_vm0, %v3519_v3 }
  0xa5   : > { %379 = vadd.xlane.f32.xlu1 %v334_v26  ;;  %377 = vadd.xlane.f32.xlu0 %v333_v27 }
  0xa9   : > { %383 = vadd.xlane.f32.xlu1 %v336_v30  ;;  %381 = vadd.xlane.f32.xlu0 %v335_v31 }
  0xad   : > { %387 = vadd.xlane.f32.xlu1 %v338_v34  ;;  %385 = vadd.xlane.f32.xlu0 %v337_v35 }
  0xb1   : > { %391 = vadd.xlane.f32.xlu1 %v340_v38  ;;  %389 = vadd.xlane.f32.xlu0 %v339_v39 }
  0xb5   : > { %395 = vadd.xlane.f32.xlu1 %v342_v42  ;;  %393 = vadd.xlane.f32.xlu0 %v341_v43 }
  0xb9   : > { %399 = vadd.xlane.f32.xlu1 %v344_v46  ;;  %397 = vadd.xlane.f32.xlu0 %v343_v47 }
  0xbd   : > { %403 = vadd.xlane.f32.xlu1 %v346_v50  ;;  %401 = vadd.xlane.f32.xlu0 %v345_v51 }
  0xc1   : > { %407 = vadd.xlane.f32.xlu1 %v348_v54  ;;  %405 = vadd.xlane.f32.xlu0 %v347_v55 }
  0xc5   : > { %411 = vadd.xlane.f32.xlu1 %v350_v58  ;;  %409 = vadd.xlane.f32.xlu0 %v349_v59 }
  0xc9   : > { %415 = vadd.xlane.f32.xlu1 %v352_v62  ;;  %413 = vadd.xlane.f32.xlu0 %v351_v63 }
 0x11a   : > { %v358_v4 = vpop.xlane.xlu1 %357  ;;  %v354_v6 = vpop.xlane.xlu0 %353 }
 0x11b   : > { %v419_v7 = vmax.f32 %v358_v4, 1e-24  ;;  %v417_v10 = vmax.f32 %v354_v6, 1e-24 }
 0x11d   : > { %2906 = vrsqrt.f32 %v419_v7 }
 0x11e   : > { %2908 = vrsqrt.f32 %v417_v10  ;;  %v360_v11 = vpop.xlane.xlu1 %359  ;;  %v356_v14 = vpop.xlane.xlu0 %355 }
 0x11f   : > { %v420_v15 = vmax.f32 %v360_v11, 1e-24  ;;  %v418_v18 = vmax.f32 %v356_v14, 1e-24 }
 0x121   : > { %2910 = vrsqrt.f32 %v420_v15 }
 0x122   : > { %2912 = vrsqrt.f32 %v418_v18  ;;  %v364_v19 = vpop.xlane.xlu1 %363  ;;  %v362_v22 = vpop.xlane.xlu0 %361 }
 0x123   : > { %v422_v23 = vmax.f32 %v364_v19, 1e-24  ;;  %v421_v26 = vmax.f32 %v362_v22, 1e-24 }
 0x125   : > { %2914 = vrsqrt.f32 %v422_v23 }
 0x126   : > { %2916 = vrsqrt.f32 %v421_v26  ;;  %v368_v27 = vpop.xlane.xlu1 %367  ;;  %v366_v30 = vpop.xlane.xlu0 %365 }
 0x127   : > { %v2907_v31 = vpop.eup %2906  ;;  %v424_v34 = vmax.f32 %v368_v27, 1e-24  ;;  %v423_v35 = vmax.f32 %v366_v30, 1e-24 }
 0x128   : > { %v2909_v38 = vpop.eup %2908  ;;  %v483_v39 = vmul.f32 2.0, %v2907_v31 }
 0x129   : > { %2918 = vrsqrt.f32 %v424_v34  ;;  %v481_v47 = vmul.f32 2.0, %v2909_v38 }
 0x12a   : > { %2920 = vrsqrt.f32 %v423_v35  ;;  %v372_v42 = vpop.xlane.xlu1 %371  ;;  %v370_v43 = vpop.xlane.xlu0 %369  ;;  %v515_v59 = vmul.f32 %v483_v39, %v3823_v0 }
 0x12b   : > { %v2911_v46 = vpop.eup %2910  ;;  %v426_v50 = vmax.f32 %v372_v42, 1e-24  ;;  %v425_v51 = vmax.f32 %v370_v43, 1e-24  ;;  %v513_v6 = vmul.f32 %v481_v47, %v3826_v1 }
 0x12c   : > { %v2913_v54 = vpop.eup %2912  ;;  %v484_v55 = vmul.f32 2.0, %v2911_v46 }
 0x12d   : > { %v482_v58 = vmul.f32 2.0, %v2913_v54  ;;  %2922 = vrsqrt.f32 %v426_v50 }
 0x12e   : > { %v516_v62 = vmul.f32 %v484_v55, %v3829_v2  ;;  %2924 = vrsqrt.f32 %v425_v51  ;;  %v376_v63 = vpop.xlane.xlu1 %375  ;;  %v374_v3 = vpop.xlane.xlu0 %373 }
 0x12f   : > { %v2915_v4 = vpop.eup %2914  ;;  %v514_v7 = vmul.f32 %v482_v58, %v3836_v5  ;;  %v428_v10 = vmax.f32 %v376_v63, 1e-24  ;;  %v427_v11 = vmax.f32 %v374_v3, 1e-24 }
 0x130   : > { %v2917_v14 = vpop.eup %2916  ;;  %v546_v15 = vpack.c.bf16 %v516_v62, %v515_v59  ;;  %v486_v18 = vmul.f32 2.0, %v2915_v4 }
 0x131   : > { %v545_v19 = vpack.c.bf16 %v514_v7, %v513_v6  ;;  %v485_v22 = vmul.f32 2.0, %v2917_v14  ;;  %2926 = vrsqrt.f32 %v428_v10 }
 0x132   : > { %562 = vst [vmem:[#allocation2 + $0x8] sm:$0xff] %v546_v15  ;;  %v518_v0 = vmul.f32 %v486_v18, %v3843_v8  ;;  %2928 = vrsqrt.f32 %v427_v11  ;;  %v380_v2 = vpop.xlane.xlu1 %379  ;;  %v378_v23 = vpop.xlane.xlu0 %377 }
 0x133   : > { %v2919_v26 = vpop.eup %2918  ;;  %561 = vst [vmem:[#allocation2] sm:$0xff] %v545_v19  ;;  %v517_v1 = vmul.f32 %v485_v22, %v3846_v9  ;;  %v430_v27 = vmax.f32 %v380_v2, 1e-24  ;;  %v429_v5 = vmax.f32 %v378_v23, 1e-24 }
 0x134   : > { %v2921_v30 = vpop.eup %2920  ;;  %v488_v31 = vmul.f32 2.0, %v2919_v26 }
 0x135   : > { %v547_v34 = vpack.c.bf16 %v518_v0, %v517_v1  ;;  %v487_v35 = vmul.f32 2.0, %v2921_v30  ;;  %2930 = vrsqrt.f32 %v430_v27 }
 0x136   : > { %v520_v38 = vmul.f32 %v488_v31, %v3853_v12  ;;  %2932 = vrsqrt.f32 %v429_v5  ;;  %v384_v39 = vpop.xlane.xlu1 %383  ;;  %v382_v42 = vpop.xlane.xlu0 %381 }
 0x137   : > { %v2923_v8 = vpop.eup %2922  ;;  %563 = vst [vmem:[#allocation2 + $0x10] sm:$0xff] %v547_v34  ;;  %v519_v43 = vmul.f32 %v487_v35, %v3856_v13  ;;  %v432_v46 = vmax.f32 %v384_v39, 1e-24  ;;  %v431_v47 = vmax.f32 %v382_v42, 1e-24 }
 0x138   : > { %v2925_v50 = vpop.eup %2924  ;;  %v490_v9 = vmul.f32 2.0, %v2923_v8 }
 0x139   : > { %v548_v51 = vpack.c.bf16 %v520_v38, %v519_v43  ;;  %v489_v54 = vmul.f32 2.0, %v2925_v50  ;;  %2934 = vrsqrt.f32 %v432_v46 }
 0x13a   : > { %v522_v55 = vmul.f32 %v490_v9, %v3863_v16  ;;  %2936 = vrsqrt.f32 %v431_v47  ;;  %v388_v58 = vpop.xlane.xlu1 %387  ;;  %v386_v59 = vpop.xlane.xlu0 %385 }
 0x13b   : > { %v2927_v12 = vpop.eup %2926  ;;  %564 = vst [vmem:[#allocation2 + $0x18] sm:$0xff] %v548_v51  ;;  %v521_v62 = vmul.f32 %v489_v54, %v3866_v17  ;;  %v434_v63 = vmax.f32 %v388_v58, 1e-24  ;;  %v433_v3 = vmax.f32 %v386_v59, 1e-24 }
 0x13c   : > { %v2929_v4 = vpop.eup %2928  ;;  %v492_v13 = vmul.f32 2.0, %v2927_v12 }
 0x13d   : > { %v549_v6 = vpack.c.bf16 %v522_v55, %v521_v62  ;;  %v491_v7 = vmul.f32 2.0, %v2929_v4  ;;  %2938 = vrsqrt.f32 %v434_v63 }
 0x13e   : > { %v524_v10 = vmul.f32 %v492_v13, %v3873_v20  ;;  %2940 = vrsqrt.f32 %v433_v3  ;;  %v392_v11 = vpop.xlane.xlu1 %391  ;;  %v390_v14 = vpop.xlane.xlu0 %389 }
 0x13f   : > { %v2931_v16 = vpop.eup %2930  ;;  %565 = vst [vmem:[#allocation2 + $0x20] sm:$0xff] %v549_v6  ;;  %v523_v15 = vmul.f32 %v491_v7, %v3876_v21  ;;  %v436_v18 = vmax.f32 %v392_v11, 1e-24  ;;  %v435_v19 = vmax.f32 %v390_v14, 1e-24 }
 0x140   : > { %v2933_v22 = vpop.eup %2932  ;;  %v494_v17 = vmul.f32 2.0, %v2931_v16 }
 0x141   : > { %v550_v0 = vpack.c.bf16 %v524_v10, %v523_v15  ;;  %v493_v2 = vmul.f32 2.0, %v2933_v22  ;;  %2942 = vrsqrt.f32 %v436_v18 }
 0x142   : > { %v526_v23 = vmul.f32 %v494_v17, %v3883_v24  ;;  %2944 = vrsqrt.f32 %v435_v19  ;;  %v396_v26 = vpop.xlane.xlu1 %395  ;;  %v394_v1 = vpop.xlane.xlu0 %393 }
 0x143   : > { %v2935_v20 = vpop.eup %2934  ;;  %566 = vst [vmem:[#allocation2 + $0x28] sm:$0xff] %v550_v0  ;;  %v525_v27 = vmul.f32 %v493_v2, %v3886_v25  ;;  %v438_v5 = vmax.f32 %v396_v26, 1e-24  ;;  %v437_v30 = vmax.f32 %v394_v1, 1e-24 }
 0x144   : > { %v2937_v31 = vpop.eup %2936  ;;  %v496_v21 = vmul.f32 2.0, %v2935_v20 }
 0x145   : > { %v551_v34 = vpack.c.bf16 %v526_v23, %v525_v27  ;;  %v495_v35 = vmul.f32 2.0, %v2937_v31  ;;  %2946 = vrsqrt.f32 %v438_v5 }
 0x146   : > { %v528_v38 = vmul.f32 %v496_v21, %v3893_v28  ;;  %2948 = vrsqrt.f32 %v437_v30  ;;  %v400_v39 = vpop.xlane.xlu1 %399  ;;  %v398_v42 = vpop.xlane.xlu0 %397 }
 0x147   : > { %v2939_v24 = vpop.eup %2938  ;;  %567 = vst [vmem:[#allocation2 + $0x30] sm:$0xff] %v551_v34  ;;  %v527_v8 = vmul.f32 %v495_v35, %v3896_v29  ;;  %v440_v43 = vmax.f32 %v400_v39, 1e-24  ;;  %v439_v46 = vmax.f32 %v398_v42, 1e-24 }
 0x148   : > { %v2941_v47 = vpop.eup %2940  ;;  %v498_v25 = vmul.f32 2.0, %v2939_v24 }
 0x149   : > { %v552_v50 = vpack.c.bf16 %v528_v38, %v527_v8  ;;  %v497_v9 = vmul.f32 2.0, %v2941_v47  ;;  %2950 = vrsqrt.f32 %v440_v43 }
 0x14a   : > { %v530_v51 = vmul.f32 %v498_v25, %v3903_v32  ;;  %2952 = vrsqrt.f32 %v439_v46  ;;  %v404_v54 = vpop.xlane.xlu1 %403  ;;  %v402_v55 = vpop.xlane.xlu0 %401 }
 0x14b   : > { %v2943_v28 = vpop.eup %2942  ;;  %568 = vst [vmem:[#allocation2 + $0x38] sm:$0xff] %v552_v50  ;;  %v529_v58 = vmul.f32 %v497_v9, %v3906_v33  ;;  %v442_v59 = vmax.f32 %v404_v54, 1e-24  ;;  %v441_v12 = vmax.f32 %v402_v55, 1e-24 }
 0x14c   : > { %v2945_v62 = vpop.eup %2944  ;;  %v500_v29 = vmul.f32 2.0, %v2943_v28 }
 0x14d   : > { %v553_v63 = vpack.c.bf16 %v530_v51, %v529_v58  ;;  %v499_v3 = vmul.f32 2.0, %v2945_v62  ;;  %2954 = vrsqrt.f32 %v442_v59 }
 0x14e   : > { %v532_v4 = vmul.f32 %v500_v29, %v3913_v36  ;;  %2956 = vrsqrt.f32 %v441_v12  ;;  %v408_v13 = vpop.xlane.xlu1 %407  ;;  %v406_v6 = vpop.xlane.xlu0 %405 }
 0x14f   : > { %v2947_v32 = vpop.eup %2946  ;;  %569 = vst [vmem:[#allocation2 + $0x40] sm:$0xff] %v553_v63  ;;  %v531_v7 = vmul.f32 %v499_v3, %v3916_v37  ;;  %v444_v10 = vmax.f32 %v408_v13, 1e-24  ;;  %v443_v11 = vmax.f32 %v406_v6, 1e-24 }
 0x150   : > { %v2949_v14 = vpop.eup %2948  ;;  %v502_v33 = vmul.f32 2.0, %v2947_v32 }
 0x151   : > { %v554_v16 = vpack.c.bf16 %v532_v4, %v531_v7  ;;  %v501_v15 = vmul.f32 2.0, %v2949_v14  ;;  %2958 = vrsqrt.f32 %v444_v10 }
 0x152   : > { %v534_v18 = vmul.f32 %v502_v33, %v3923_v40  ;;  %2960 = vrsqrt.f32 %v443_v11  ;;  %v412_v19 = vpop.xlane.xlu1 %411  ;;  %v410_v22 = vpop.xlane.xlu0 %409 }
 0x153   : > { %v2951_v36 = vpop.eup %2950  ;;  %570 = vst [vmem:[#allocation2 + $0x48] sm:$0xff] %v554_v16  ;;  %v533_v17 = vmul.f32 %v501_v15, %v3926_v41  ;;  %v446_v0 = vmax.f32 %v412_v19, 1e-24  ;;  %v445_v2 = vmax.f32 %v410_v22, 1e-24 }
 0x154   : > { %v2953_v23 = vpop.eup %2952  ;;  %v504_v37 = vmul.f32 2.0, %v2951_v36 }
 0x155   : > { %v555_v26 = vpack.c.bf16 %v534_v18, %v533_v17  ;;  %v503_v1 = vmul.f32 2.0, %v2953_v23  ;;  %2962 = vrsqrt.f32 %v446_v0 }
 0x156   : > { %v536_v20 = vmul.f32 %v504_v37, %v3933_v44  ;;  %2964 = vrsqrt.f32 %v445_v2  ;;  %v416_v27 = vpop.xlane.xlu1 %415  ;;  %v414_v5 = vpop.xlane.xlu0 %413 }
 0x157   : > { %v2955_v40 = vpop.eup %2954  ;;  %571 = vst [vmem:[#allocation2 + $0x50] sm:$0xff] %v555_v26  ;;  %v535_v30 = vmul.f32 %v503_v1, %v3936_v45  ;;  %v448_v31 = vmax.f32 %v416_v27, 1e-24  ;;  %v447_v21 = vmax.f32 %v414_v5, 1e-24 }
 0x158   : > { %v2957_v34 = vpop.eup %2956  ;;  %v506_v41 = vmul.f32 2.0, %v2955_v40 }
 0x159   : > { %v556_v35 = vpack.c.bf16 %v536_v20, %v535_v30  ;;  %v505_v38 = vmul.f32 2.0, %v2957_v34  ;;  %2966 = vrsqrt.f32 %v448_v31 }
 0x15a   : > { %v538_v39 = vmul.f32 %v506_v41, %v3943_v48  ;;  %2968 = vrsqrt.f32 %v447_v21 }
 0x15b   : > { %v2959_v42 = vpop.eup %2958  ;;  %572 = vst [vmem:[#allocation2 + $0x58] sm:$0xff] %v556_v35  ;;  %v537_v44 = vmul.f32 %v505_v38, %v3946_v49 }
 0x15c   : > { %v2961_v24 = vpop.eup %2960  ;;  %v508_v8 = vmul.f32 2.0, %v2959_v42 }
 0x15d   : > { %v557_v43 = vpack.c.bf16 %v538_v39, %v537_v44  ;;  %v507_v46 = vmul.f32 2.0, %v2961_v24 }
 0x15e   : > { %v540_v45 = vmul.f32 %v508_v8, %v3953_v52 }
 0x15f   : > { %v2963_v47 = vpop.eup %2962  ;;  %573 = vst [vmem:[#allocation2 + $0x60] sm:$0xff] %v557_v43  ;;  %v539_v25 = vmul.f32 %v507_v46, %v3956_v53 }
 0x160   : > { %v2965_v50 = vpop.eup %2964  ;;  %v510_v9 = vmul.f32 2.0, %v2963_v47 }
 0x161   : > { %v558_v51 = vpack.c.bf16 %v540_v45, %v539_v25  ;;  %v509_v54 = vmul.f32 2.0, %v2965_v50 }
 0x162   : > { %v542_v48 = vmul.f32 %v510_v9, %v3963_v56 }
 0x163   : > { %v2967_v55 = vpop.eup %2966  ;;  %574 = vst [vmem:[#allocation2 + $0x68] sm:$0xff] %v558_v51  ;;  %v541_v49 = vmul.f32 %v509_v54, %v3966_v57 }
 0x164   : > { %v2969_v28 = vpop.eup %2968  ;;  %v512_v58 = vmul.f32 2.0, %v2967_v55 }
 0x165   : > { %v559_v59 = vpack.c.bf16 %v542_v48, %v541_v49  ;;  %v511_v12 = vmul.f32 2.0, %v2969_v28 }
 0x166   : > { %v544_v52 = vmul.f32 %v512_v58, %v3973_v60 }
 0x167   : > { %575 = vst [vmem:[#allocation2 + $0x70] sm:$0xff] %v559_v59  ;;  %v543_v62 = vmul.f32 %v511_v12, %v3976_v61 }
 0x169   : > { %v560_v53 = vpack.c.bf16 %v544_v52, %v543_v62 }
 0x16b   : > { %576 = vst [vmem:[#allocation2 + $0x78] sm:$0xff] %v560_v53 }
 0x16c PF: > { %v2970_v56 = vld [vmem:[%s3803_s15 + $0x40] sm:$0xff]   ;;  %v2974_v29 = vld [vmem:[%s3803_s15 + $0x48] sm:$0xff]   ;;  %v2978_v13 = vld [vmem:[%s3803_s15 + $0x50] sm:$0xff]   ;;  %vm1876_vm1 = vcmask 7168   ;;  %p2615_p8 = scmp.ne.s32.totalorder %s3494_s18, 1 }
 0x16d   : > { %v2971_v57 = vld [vmem:[%s3803_s15 + $0xc0] sm:$0xff]   ;;  %2700 = vmatprep.subr.bf16.mxu0 %v2970_v56  ;;  %v2975_v63 = vld [vmem:[%s3803_s15 + $0xc8] sm:$0xff]   ;;  %v2979_v6 = vld [vmem:[%s3803_s15 + $0xd0] sm:$0xff]  }
 0x16e   : > { %v2972_v60 = vld [vmem:[%s3803_s15] sm:$0xff]   ;;  %2748 = vmatprep.subr.bf16.mxu1 %v2971_v57  ;;  %v2976_v3 = vld [vmem:[%s3803_s15 + $0x8] sm:$0xff]   ;;  %v2980_v32 = vld [vmem:[%s3803_s15 + $0x10] sm:$0xff]  }
 0x16f   : > { %v2973_v61 = vld [vmem:[%s3803_s15 + $0x80] sm:$0xff]   ;;  %2701 = vmatpush3.bf16.xpose.msra.mxu0 %v2972_v60  ;;  %v2977_v4 = vld [vmem:[%s3803_s15 + $0x88] sm:$0xff]   ;;  %v2981_v7 = vld [vmem:[%s3803_s15 + $0x90] sm:$0xff]  }
 0x170   : > { %2749 = vmatpush3.bf16.xpose.msra.mxu1 %v2973_v61  ;;  %2702 = vmatprep.subr.bf16.mxu0 %v2974_v29  ;;  %v2982_v10 = vld [vmem:[%s3803_s15 + $0x58] sm:$0xff]   ;;  %v2986_v16 = vld [vmem:[%s3803_s15 + $0x60] sm:$0xff]   ;;  %v2990_v36 = vld [vmem:[%s3803_s15 + $0x68] sm:$0xff]  }
 0x171   : > { %2750 = vmatprep.subr.bf16.mxu1 %v2975_v63  ;;  %v2983_v11 = vld [vmem:[%s3803_s15 + $0xd8] sm:$0xff]   ;;  %v2987_v15 = vld [vmem:[%s3803_s15 + $0xe0] sm:$0xff]   ;;  %v2991_v17 = vld [vmem:[%s3803_s15 + $0xe8] sm:$0xff]  }
 0x172   : > { %v2984_v14 = vld [vmem:[%s3803_s15 + $0x18] sm:$0xff]   ;;  %v2988_v18 = vld [vmem:[%s3803_s15 + $0x20] sm:$0xff]   ;;  %v2992_v0 = vld [vmem:[%s3803_s15 + $0x28] sm:$0xff]  }
 0x173   : > { %v2985_v33 = vld [vmem:[%s3803_s15 + $0x98] sm:$0xff]   ;;  %v610_v19 = vld [vmem:[#allocation2] sm:$0xff]  ;;  %v2993_v2 = vld [vmem:[%s3803_s15 + $0xa8] sm:$0xff]  }
 0x174   : > { %v2989_v22 = vld [vmem:[%s3803_s15 + $0xa0] sm:$0xff]   ;;  %2716 = vmatprep.mubr.bf16.mxu0 %v610_v19  ;;  %2764 = vmatprep.mubr.bf16.mxu1 %v610_v19  ;;  %v2994_v23 = vld [vmem:[%s3803_s15 + $0x70] sm:$0xff]   ;;  %v2998_v20 = vld [vmem:[%s3803_s15 + $0x78] sm:$0xff]  }
 0x175   : > { %v2995_v37 = vld [vmem:[%s3803_s15 + $0xf0] sm:$0xff]   ;;  %v2999_v27 = vld [vmem:[%s3803_s15 + $0xf8] sm:$0xff]   ;;  %v611_v30 = vld [vmem:[#allocation2 + $0x8] sm:$0xff] }
 0x176   : > { %v2996_v26 = vld [vmem:[%s3803_s15 + $0x30] sm:$0xff]   ;;  %v3000_v5 = vld [vmem:[%s3803_s15 + $0x38] sm:$0xff]   ;;  %v614_v34 = vld [vmem:[#allocation2 + $0x20] sm:$0xff] }
 0x177   : > { %2703 = vmatpush3.bf16.xpose.msra.mxu0 %v2976_v3  ;;  %v2997_v1 = vld [vmem:[%s3803_s15 + $0xb0] sm:$0xff]   ;;  %v3001_v40 = vld [vmem:[%s3803_s15 + $0xb8] sm:$0xff]   ;;  %v615_v41 = vld [vmem:[#allocation2 + $0x28] sm:$0xff] }
 0x178   : > { %2751 = vmatpush3.bf16.xpose.msra.mxu1 %v2977_v4  ;;  %2704 = vmatprep.subr.bf16.mxu0 %v2978_v13  ;;  %v612_v31 = vld [vmem:[#allocation2 + $0x10] sm:$0xff]  ;;  %v613_v21 = vld [vmem:[#allocation2 + $0x18] sm:$0xff]  ;;  %v618_v39 = vld [vmem:[#allocation2 + $0x40] sm:$0xff] }
 0x179   : > { %2752 = vmatprep.subr.bf16.mxu1 %v2979_v6  ;;  %v616_v35 = vld [vmem:[#allocation2 + $0x30] sm:$0xff]  ;;  %v617_v38 = vld [vmem:[#allocation2 + $0x38] sm:$0xff]  ;;  %v619_v42 = vld [vmem:[#allocation2 + $0x48] sm:$0xff] }
 0x17a   : > { %v620_v44 = vld [vmem:[#allocation2 + $0x50] sm:$0xff]  ;;  %v621_v24 = vld [vmem:[#allocation2 + $0x58] sm:$0xff]  ;;  %v622_v8 = vld [vmem:[#allocation2 + $0x60] sm:$0xff] }
 0x17b   : > { %v623_v43 = vld [vmem:[#allocation2 + $0x68] sm:$0xff]  ;;  %v624_v46 = vld [vmem:[#allocation2 + $0x70] sm:$0xff]  ;;  %v625_v45 = vld [vmem:[#allocation2 + $0x78] sm:$0xff] }
 0x17f   : > { %2705 = vmatpush3.bf16.xpose.msra.mxu0 %v2980_v32 }
 0x180   : > { %2753 = vmatpush3.bf16.xpose.msra.mxu1 %v2981_v7  ;;  %2706 = vmatprep.subr.bf16.mxu0 %v2982_v10 }
 0x181   : > { %2754 = vmatprep.subr.bf16.mxu1 %v2983_v11 }
 0x187   : > { %2707 = vmatpush3.bf16.xpose.msra.mxu0 %v2984_v14 }
 0x188   : > { %2755 = vmatpush3.bf16.xpose.msra.mxu1 %v2985_v33  ;;  %2708 = vmatprep.subr.bf16.mxu0 %v2986_v16 }
 0x189   : > { %2756 = vmatprep.subr.bf16.mxu1 %v2987_v15 }
 0x18f   : > { %2709 = vmatpush3.bf16.xpose.msra.mxu0 %v2988_v18 }
 0x190   : > { %2757 = vmatpush3.bf16.xpose.msra.mxu1 %v2989_v22  ;;  %2710 = vmatprep.subr.bf16.mxu0 %v2990_v36 }
 0x191   : > { %2758 = vmatprep.subr.bf16.mxu1 %v2991_v17 }
 0x197   : > { %2711 = vmatpush3.bf16.xpose.msra.mxu0 %v2992_v0 }
 0x198   : > { %2759 = vmatpush3.bf16.xpose.msra.mxu1 %v2993_v2  ;;  %2712 = vmatprep.subr.bf16.mxu0 %v2994_v23 }
 0x199   : > { %2760 = vmatprep.subr.bf16.mxu1 %v2995_v37 }
 0x19f   : > { %2713 = vmatpush3.bf16.xpose.msra.mxu0 %v2996_v26 }
 0x1a0   : > { %2761 = vmatpush3.bf16.xpose.msra.mxu1 %v2997_v1  ;;  %2714 = vmatprep.subr.bf16.mxu0 %v2998_v20 }
 0x1a1   : > { %2762 = vmatprep.subr.bf16.mxu1 %v2999_v27 }
 0x1a7   : > { %2715 = vmatpush3.bf16.xpose.msra.mxu0 %v3000_v5 }
 0x1a8   : > { %2763 = vmatpush3.bf16.xpose.msra.mxu1 %v3001_v40 }
 0x1ae   : > { %2717 = vmatmul.mubr.bf16.vlgmr.msra.gmra.mrb[0].mxu0 %v610_v19 }
 0x1af   : > { %2765 = vmatmul.mubr.bf16.vlgmr.msra.gmra.mrb[0].mxu1 %v610_v19  ;;  %2718 = vmatprep.mubr.bf16.mxu0 %v611_v30 }
 0x1b0   : > { %2766 = vmatprep.mubr.bf16.mxu1 %v611_v30 }
 0x1b6   : > { %2719 = vmatmul.mubr.bf16.gmra.mrb[4].mxu0 %v611_v30 }
 0x1b7   : > { %2767 = vmatmul.mubr.bf16.gmra.mrb[4].mxu1 %v611_v30  ;;  %2720 = vmatprep.mubr.bf16.mxu0 %v612_v31 }
 0x1b8   : > { %2768 = vmatprep.mubr.bf16.mxu1 %v612_v31 }
 0x1be   : > { %2721 = vmatmul.mubr.bf16.gmra.mrb[8].mxu0 %v612_v31 }
 0x1bf   : > { %2769 = vmatmul.mubr.bf16.gmra.mrb[8].mxu1 %v612_v31  ;;  %2722 = vmatprep.mubr.bf16.mxu0 %v613_v21 }
 0x1c0   : > { %2770 = vmatprep.mubr.bf16.mxu1 %v613_v21 }
 0x1c6   : > { %2723 = vmatmul.mubr.bf16.gmra.mrb[12].mxu0 %v613_v21 }
 0x1c7   : > { %2771 = vmatmul.mubr.bf16.gmra.mrb[12].mxu1 %v613_v21  ;;  %2724 = vmatprep.mubr.bf16.mxu0 %v614_v34 }
 0x1c8   : > { %2772 = vmatprep.mubr.bf16.mxu1 %v614_v34 }
 0x1ce   : > { %2725 = vmatmul.mubr.bf16.gmra.mrb[16].mxu0 %v614_v34 }
 0x1cf   : > { %2773 = vmatmul.mubr.bf16.gmra.mrb[16].mxu1 %v614_v34  ;;  %2726 = vmatprep.mubr.bf16.mxu0 %v615_v41 }
 0x1d0   : > { %2774 = vmatprep.mubr.bf16.mxu1 %v615_v41 }
 0x1d6   : > { %2727 = vmatmul.mubr.bf16.gmra.mrb[20].mxu0 %v615_v41 }
 0x1d7   : > { %2775 = vmatmul.mubr.bf16.gmra.mrb[20].mxu1 %v615_v41  ;;  %2728 = vmatprep.mubr.bf16.mxu0 %v616_v35 }
 0x1d8   : > { %2776 = vmatprep.mubr.bf16.mxu1 %v616_v35 }
 0x1de   : > { %2729 = vmatmul.mubr.bf16.gmra.mrb[24].mxu0 %v616_v35 }
 0x1df   : > { %2777 = vmatmul.mubr.bf16.gmra.mrb[24].mxu1 %v616_v35  ;;  %2730 = vmatprep.mubr.bf16.mxu0 %v617_v38 }
 0x1e0   : > { %2778 = vmatprep.mubr.bf16.mxu1 %v617_v38 }
 0x1e6   : > { %2731 = vmatmul.mubr.bf16.gmra.mrb[28].mxu0 %v617_v38 }
 0x1e7   : > { %2779 = vmatmul.mubr.bf16.gmra.mrb[28].mxu1 %v617_v38  ;;  %2732 = vmatprep.mubr.bf16.mxu0 %v618_v39 }
 0x1e8   : > { %2780 = vmatprep.mubr.bf16.mxu1 %v618_v39 }
 0x1ee   : > { %2733 = vmatmul.mubr.bf16.gmra.mrb[32].mxu0 %v618_v39 }
 0x1ef   : > { %2781 = vmatmul.mubr.bf16.gmra.mrb[32].mxu1 %v618_v39  ;;  %2734 = vmatprep.mubr.bf16.mxu0 %v619_v42 }
 0x1f0   : > { %2782 = vmatprep.mubr.bf16.mxu1 %v619_v42 }
 0x1f6   : > { %2735 = vmatmul.mubr.bf16.gmra.mrb[36].mxu0 %v619_v42 }
 0x1f7   : > { %2783 = vmatmul.mubr.bf16.gmra.mrb[36].mxu1 %v619_v42  ;;  %2736 = vmatprep.mubr.bf16.mxu0 %v620_v44 }
 0x1f8   : > { %2784 = vmatprep.mubr.bf16.mxu1 %v620_v44 }
 0x1fe   : > { %2737 = vmatmul.mubr.bf16.gmra.mrb[40].mxu0 %v620_v44 }
 0x1ff   : > { %2785 = vmatmul.mubr.bf16.gmra.mrb[40].mxu1 %v620_v44  ;;  %2738 = vmatprep.mubr.bf16.mxu0 %v621_v24 }
 0x200   : > { %2786 = vmatprep.mubr.bf16.mxu1 %v621_v24 }
 0x206   : > { %2739 = vmatmul.mubr.bf16.gmra.mrb[44].mxu0 %v621_v24 }
 0x207   : > { %2787 = vmatmul.mubr.bf16.gmra.mrb[44].mxu1 %v621_v24  ;;  %2740 = vmatprep.mubr.bf16.mxu0 %v622_v8 }
 0x208   : > { %2788 = vmatprep.mubr.bf16.mxu1 %v622_v8 }
 0x20e   : > { %2741 = vmatmul.mubr.bf16.gmra.mrb[48].mxu0 %v622_v8 }
 0x20f   : > { %2789 = vmatmul.mubr.bf16.gmra.mrb[48].mxu1 %v622_v8  ;;  %2742 = vmatprep.mubr.bf16.mxu0 %v623_v43 }
 0x210   : > { %2790 = vmatprep.mubr.bf16.mxu1 %v623_v43 }
 0x216   : > { %2743 = vmatmul.mubr.bf16.gmra.mrb[52].mxu0 %v623_v43 }
 0x217   : > { %2791 = vmatmul.mubr.bf16.gmra.mrb[52].mxu1 %v623_v43  ;;  %2744 = vmatprep.mubr.bf16.mxu0 %v624_v46 }
 0x218   : > { %2792 = vmatprep.mubr.bf16.mxu1 %v624_v46 }
 0x21e   : > { %2745 = vmatmul.mubr.bf16.gmra.mrb[56].mxu0 %v624_v46 }
 0x21f   : > { %2793 = vmatmul.mubr.bf16.gmra.mrb[56].mxu1 %v624_v46  ;;  %2746 = vmatprep.mubr.bf16.mxu0 %v625_v45 }
 0x220   : > { %2794 = vmatprep.mubr.bf16.mxu1 %v625_v45 }
 0x226   : > { %2747 = vmatmul.mubr.bf16.gmra.mrb[60].mxu0 %v625_v45 }
 0x227   : > { %2795 = vmatmul.mubr.bf16.gmra.mrb[60].mxu1 %v625_v45 }
 0x281   : > { %v916_v47 = vpop.f32.mrb[0].mxu0 }
 0x282   : > { %v2487_v25 = vadd.f32 -2.0, %v916_v47  ;;  %v1109_v50 = vpop.f32.mrb[0].mxu1  ;;  %v918_v9 = vpop.f32.mrb[1].mxu0 }
 0x283   : > { %v2489_v51 = vadd.f32 -2.0, %v1109_v50  ;;  %v2488_v54 = vadd.f32 -2.0, %v918_v9  ;;  %v1111_v48 = vpop.f32.mrb[1].mxu1  ;;  %v920_v55 = vpop.f32.mrb[2].mxu0 }
 0x284   : > { %v1396_v49 = vmul.f32 1.442695, %v2487_v25  ;;  %v2490_v28 = vadd.f32 -2.0, %v1111_v48  ;;  %v2491_v58 = vadd.f32 -2.0, %v920_v55  ;;  %v1113_v59 = vpop.f32.mrb[2].mxu1  ;;  %v922_v12 = vpop.f32.mrb[3].mxu0 }
 0x285   : > { %v1400_v52 = vmul.f32 1.442695, %v2489_v51  ;;  %v1398_v62 = vmul.f32 1.442695, %v2488_v54  ;;  %v2493_v53 = vadd.f32 -2.0, %v1113_v59  ;;  %v2492_v56 = vadd.f32 -2.0, %v922_v12 }
 0x286   : > { %3002 = vpow2.f32 %v1396_v49  ;;  %v1402_v57 = vmul.f32 1.442695, %v2490_v28  ;;  %v1404_v60 = vmul.f32 1.442695, %v2491_v58  ;;  %v1115_v61 = vpop.f32.mrb[3].mxu1 }
 0x287   : > { %3004 = vpow2.f32 %v1400_v52  ;;  %v1408_v29 = vmul.f32 1.442695, %v2493_v53  ;;  %v2494_v63 = vadd.f32 -2.0, %v1115_v61  ;;  %v1406_v3 = vmul.f32 1.442695, %v2492_v56 }
 0x288   : > { %3006 = vpow2.f32 %v1398_v62 }
 0x289   : > { %3008 = vpow2.f32 %v1402_v57  ;;  %v1410_v4 = vmul.f32 1.442695, %v2494_v63  ;;  %v926_v13 = vpop.f32.mrb[4].mxu0 }
 0x28a   : > { %3010 = vpow2.f32 %v1404_v60  ;;  %v2495_v6 = vadd.f32 -2.0, %v926_v13  ;;  %v1119_v32 = vpop.f32.mrb[4].mxu1  ;;  %v928_v7 = vpop.f32.mrb[5].mxu0 }
 0x28b   : > { %3012 = vpow2.f32 %v1408_v29  ;;  %v2497_v10 = vadd.f32 -2.0, %v1119_v32  ;;  %v2496_v11 = vadd.f32 -2.0, %v928_v7  ;;  %v1121_v14 = vpop.f32.mrb[5].mxu1  ;;  %v930_v33 = vpop.f32.mrb[6].mxu0 }
 0x28c   : > { %3014 = vpow2.f32 %v1406_v3  ;;  %v1412_v16 = vmul.f32 1.442695, %v2495_v6  ;;  %v2498_v15 = vadd.f32 -2.0, %v1121_v14  ;;  %v2499_v18 = vadd.f32 -2.0, %v930_v33  ;;  %v1123_v19 = vpop.f32.mrb[6].mxu1  ;;  %v932_v22 = vpop.f32.mrb[7].mxu0 }
 0x28d   : > { %3016 = vpow2.f32 %v1410_v4  ;;  %v1416_v36 = vmul.f32 1.442695, %v2497_v10  ;;  %v1414_v17 = vmul.f32 1.442695, %v2496_v11  ;;  %v2501_v0 = vadd.f32 -2.0, %v1123_v19  ;;  %v1125_v2 = vpop.f32.mrb[7].mxu1 }
 0x28e   : > { %3018 = vpow2.f32 %v1412_v16  ;;  %v1418_v23 = vmul.f32 1.442695, %v2498_v15  ;;  %v1420_v37 = vmul.f32 1.442695, %v2499_v18  ;;  %v2500_v26 = vadd.f32 -2.0, %v932_v22 }
 0x28f   : > { %3020 = vpow2.f32 %v1416_v36  ;;  %v1424_v1 = vmul.f32 1.442695, %v2501_v0  ;;  %v2502_v20 = vadd.f32 -2.0, %v1125_v2 }
 0x290   : > { %v3003_v27 = vpop.eup %3002  ;;  %3022 = vpow2.f32 %v1414_v17  ;;  %v1422_v5 = vmul.f32 1.442695, %v2500_v26 }
 0x291   : > { %v3005_v40 = vpop.eup %3004  ;;  %3024 = vpow2.f32 %v1418_v23  ;;  %v1426_v30 = vmul.f32 1.442695, %v2502_v20  ;;  %v936_v31 = vpop.f32.mrb[8].mxu0 }
 0x292   : > { %v3007_v21 = vpop.eup %3006  ;;  %3026 = vpow2.f32 %v1420_v37  ;;  %v2503_v34 = vadd.f32 -2.0, %v936_v31  ;;  %v1129_v41 = vpop.f32.mrb[8].mxu1 }
 0x293   : > { %v938_v35 = vpop.f32.mrb[9].mxu0  ;;  %v3009_v38 = vpop.eup %3008  ;;  %3028 = vpow2.f32 %v1424_v1  ;;  %v2505_v39 = vadd.f32 -2.0, %v1129_v41  ;;  %v1684_v8 = vadd.f32 %v3007_v21, %v3003_v27 }
 0x294   : > { %v2504_v42 = vadd.f32 -2.0, %v938_v35  ;;  %v1131_v44 = vpop.f32.mrb[9].mxu1  ;;  %v940_v24 = vpop.f32.mrb[10].mxu0  ;;  %3030 = vpow2.f32 %v1422_v5  ;;  %v1428_v46 = vmul.f32 1.442695, %v2503_v34 }
 0x295   : > { %v3011_v43 = vpop.eup %3010  ;;  %v2506_v45 = vadd.f32 -2.0, %v1131_v44  ;;  %v2507_v47 = vadd.f32 -2.0, %v940_v24  ;;  %v1133_v25 = vpop.f32.mrb[10].mxu1  ;;  %3032 = vpow2.f32 %v1426_v30  ;;  %v1432_v51 = vmul.f32 1.442695, %v2505_v39 }
 0x296   : > { %v942_v50 = vpop.f32.mrb[11].mxu0  ;;  %v3013_v9 = vpop.eup %3012  ;;  %v1430_v54 = vmul.f32 1.442695, %v2504_v42  ;;  %v2509_v48 = vadd.f32 -2.0, %v1133_v25  ;;  %3034 = vpow2.f32 %v1428_v46  ;;  %v1685_v53 = vadd.f32 %v3005_v40, %v1684_v8 }
 0x297   : > { %v1135_v55 = vpop.f32.mrb[11].mxu1  ;;  %v3015_v49 = vpop.eup %3014  ;;  %v1434_v28 = vmul.f32 1.442695, %v2506_v45  ;;  %v1436_v58 = vmul.f32 1.442695, %v2507_v47  ;;  %v2508_v59 = vadd.f32 -2.0, %v942_v50  ;;  %3036 = vpow2.f32 %v1432_v51 }
 0x298   : > { %v3017_v12 = vpop.eup %3016  ;;  %v1440_v52 = vmul.f32 1.442695, %v2509_v48  ;;  %v2510_v62 = vadd.f32 -2.0, %v1135_v55  ;;  %3038 = vpow2.f32 %v1430_v54  ;;  %v1689_v60 = vadd.f32 %v3015_v49, %v3011_v43 }
 0x299   : > { %v3019_v56 = vpop.eup %3018  ;;  %v1438_v57 = vmul.f32 1.442695, %v2508_v59  ;;  %3040 = vpow2.f32 %v1434_v28  ;;  %v1686_v63 = vadd.f32 %v3009_v38, %v1685_v53  ;;  %v946_v3 = vpop.f32.mrb[12].mxu0 }
 0x29a   : > { %v3021_v61 = vpop.eup %3020  ;;  %v1442_v29 = vmul.f32 1.442695, %v2510_v62  ;;  %3042 = vpow2.f32 %v1436_v58  ;;  %v2511_v13 = vadd.f32 -2.0, %v946_v3  ;;  %v1139_v6 = vpop.f32.mrb[12].mxu1  ;;  %v1690_v7 = vadd.f32 %v3013_v9, %v1689_v60 }
 0x29b   : > { %v3023_v4 = vpop.eup %3022  ;;  %v948_v32 = vpop.f32.mrb[13].mxu0  ;;  %3044 = vpow2.f32 %v1440_v52  ;;  %1687 = vadd.xlane.f32.xlu0 %v1686_v63  ;;  %v2513_v11 = vadd.f32 -2.0, %v1139_v6 }
 0x29c   : > { %v3025_v10 = vpop.eup %3024  ;;  %v2512_v14 = vadd.f32 -2.0, %v948_v32  ;;  %v1141_v33 = vpop.f32.mrb[13].mxu1  ;;  %v1694_v15 = vadd.f32 %v3023_v4, %v3019_v56  ;;  %3046 = vpow2.f32 %v1438_v57  ;;  %v1444_v19 = vmul.f32 1.442695, %v2511_v13 }
 0x29d   : > { %v950_v16 = vpop.f32.mrb[14].mxu0  ;;  %v3027_v18 = vpop.eup %3026  ;;  %v2514_v22 = vadd.f32 -2.0, %v1141_v33  ;;  %3048 = vpow2.f32 %v1442_v29  ;;  %v1448_v23 = vmul.f32 1.442695, %v2513_v11  ;;  %v1691_v21 = vadd.f32 %v3017_v12, %v1690_v7 }
 0x29e   : > { %v2515_v36 = vadd.f32 -2.0, %v950_v16  ;;  %v1143_v17 = vpop.f32.mrb[14].mxu1  ;;  %v952_v0 = vpop.f32.mrb[15].mxu0  ;;  %v1446_v37 = vmul.f32 1.442695, %v2512_v14  ;;  %3050 = vpow2.f32 %v1444_v19  ;;  %v1695_v38 = vadd.f32 %v3021_v61, %v1694_v15 }
 0x29f   : > { %v3029_v2 = vpop.eup %3028  ;;  %v2517_v26 = vadd.f32 -2.0, %v1143_v17  ;;  %v1145_v1 = vpop.f32.mrb[15].mxu1  ;;  %v1450_v27 = vmul.f32 1.442695, %v2514_v22  ;;  %3052 = vpow2.f32 %v1448_v23  ;;  %v2516_v34 = vadd.f32 -2.0, %v952_v0  ;;  %1692 = vadd.xlane.f32.xlu0 %v1691_v21 }
 0x2a0   : > { %v3031_v20 = vpop.eup %3030  ;;  %v1452_v5 = vmul.f32 1.442695, %v2515_v36  ;;  %v2518_v40 = vadd.f32 -2.0, %v1145_v1  ;;  %3054 = vpow2.f32 %v1446_v37  ;;  %v1696_v43 = vadd.f32 %v3025_v10, %v1695_v38 }
 0x2a1   : > { %v3033_v30 = vpop.eup %3032  ;;  %v1456_v31 = vmul.f32 1.442695, %v2517_v26  ;;  %v1699_v39 = vadd.f32 %v3031_v20, %v3027_v18  ;;  %3056 = vpow2.f32 %v1450_v27  ;;  %v1454_v44 = vmul.f32 1.442695, %v2516_v34  ;;  %v956_v24 = vpop.f32.mrb[16].mxu0 }
 0x2a2   : > { %v3035_v41 = vpop.eup %3034  ;;  %v1458_v35 = vmul.f32 1.442695, %v2518_v40  ;;  %3058 = vpow2.f32 %v1452_v5  ;;  %v2519_v46 = vadd.f32 -2.0, %v956_v24  ;;  %v1149_v45 = vpop.f32.mrb[16].mxu1  ;;  %1697 = vadd.xlane.f32.xlu1 %v1696_v43 }
 0x2a3   : > { %v3037_v42 = vpop.eup %3036  ;;  %v958_v47 = vpop.f32.mrb[17].mxu0  ;;  %v1700_v25 = vadd.f32 %v3029_v2, %v1699_v39  ;;  %3060 = vpow2.f32 %v1456_v31  ;;  %v2521_v9 = vadd.f32 -2.0, %v1149_v45 }
 0x2a4   : > { %v3039_v8 = vpop.eup %3038  ;;  %v2520_v51 = vadd.f32 -2.0, %v958_v47  ;;  %v1151_v54 = vpop.f32.mrb[17].mxu1  ;;  %3062 = vpow2.f32 %v1458_v35  ;;  %v1460_v28 = vmul.f32 1.442695, %v2519_v46 }
 0x2a5   : > { %v3041_v50 = vpop.eup %3040  ;;  %v960_v48 = vpop.f32.mrb[18].mxu0  ;;  %v1704_v55 = vadd.f32 %v3039_v8, %v3035_v41  ;;  %v2522_v58 = vadd.f32 -2.0, %v1151_v54  ;;  %3064 = vpow2.f32 %v1454_v44  ;;  %v1464_v53 = vmul.f32 1.442695, %v2521_v9 }
 0x2a6   : > { %v3043_v49 = vpop.eup %3042  ;;  %v2523_v59 = vadd.f32 -2.0, %v960_v48  ;;  %v1153_v12 = vpop.f32.mrb[18].mxu1  ;;  %v1462_v56 = vmul.f32 1.442695, %v2520_v51  ;;  %3066 = vpow2.f32 %v1460_v28  ;;  %v1701_v6 = vadd.f32 %v3033_v30, %v1700_v25 }
 0x2a7   : > { %v962_v52 = vpop.f32.mrb[19].mxu0  ;;  %v3045_v62 = vpop.eup %3044  ;;  %v2525_v57 = vadd.f32 -2.0, %v1153_v12  ;;  %v1466_v29 = vmul.f32 1.442695, %v2522_v58  ;;  %3068 = vpow2.f32 %v1464_v53  ;;  %v1705_v11 = vadd.f32 %v3037_v42, %v1704_v55 }
 0x2a8   : > { %v1155_v60 = vpop.f32.mrb[19].mxu1  ;;  %v3047_v61 = vpop.eup %3046  ;;  %v1468_v63 = vmul.f32 1.442695, %v2523_v59  ;;  %v2524_v32 = vadd.f32 -2.0, %v962_v52  ;;  %3070 = vpow2.f32 %v1462_v56  ;;  %1702 = vadd.xlane.f32.xlu1 %v1701_v6 }
 0x2a9   : > { %v2526_v3 = vadd.f32 -2.0, %v1155_v60  ;;  %v3049_v4 = vpop.eup %3048  ;;  %v1472_v13 = vmul.f32 1.442695, %v2525_v57  ;;  %v1709_v14 = vadd.f32 %v3047_v61, %v3043_v49  ;;  %3072 = vpow2.f32 %v1466_v29  ;;  %v966_v15 = vpop.f32.mrb[20].mxu0 }
 0x2aa   : > { %v3051_v7 = vpop.eup %3050  ;;  %v1470_v16 = vmul.f32 1.442695, %v2524_v32  ;;  %3074 = vpow2.f32 %v1468_v63  ;;  %v1706_v19 = vadd.f32 %v3041_v50, %v1705_v11  ;;  %v2527_v22 = vadd.f32 -2.0, %v966_v15  ;;  %v1159_v36 = vpop.f32.mrb[20].mxu1 }
 0x2ab   : > { %v1474_v10 = vmul.f32 1.442695, %v2526_v3  ;;  %v3053_v33 = vpop.eup %3052  ;;  %v1710_v17 = vadd.f32 %v3045_v62, %v1709_v14  ;;  %v968_v0 = vpop.f32.mrb[21].mxu0  ;;  %3076 = vpow2.f32 %v1472_v13  ;;  %v2529_v23 = vadd.f32 -2.0, %v1159_v36 }
 0x2ac   : > { %v3055_v18 = vpop.eup %3054  ;;  %v1161_v37 = vpop.f32.mrb[21].mxu1  ;;  %v2528_v26 = vadd.f32 -2.0, %v968_v0  ;;  %1707 = vadd.xlane.f32.xlu0 %v1706_v19  ;;  %v1476_v5 = vmul.f32 1.442695, %v2527_v22 }
 0x2ad   : > { %v3057_v2 = vpop.eup %3056  ;;  %v970_v1 = vpop.f32.mrb[22].mxu0  ;;  %v1714_v20 = vadd.f32 %v3055_v18, %v3051_v7  ;;  %3078 = vpow2.f32 %v1474_v10  ;;  %v2530_v40 = vadd.f32 -2.0, %v1161_v37  ;;  %v1711_v30 = vadd.f32 %v3049_v4, %v1710_v17 }
 0x2ae   : > { %v3059_v27 = vpop.eup %3058  ;;  %v1163_v31 = vpop.f32.mrb[22].mxu1  ;;  %3080 = vpow2.f32 %v1470_v16  ;;  %v1480_v41 = vmul.f32 1.442695, %v2529_v23  ;;  %v1478_v35 = vmul.f32 1.442695, %v2528_v26  ;;  %v2531_v38 = vadd.f32 -2.0, %v970_v1 }
 0x2af   : > { %v972_v21 = vpop.f32.mrb[23].mxu0  ;;  %v3061_v34 = vpop.eup %3060  ;;  %3082 = vpow2.f32 %v1476_v5  ;;  %v1482_v44 = vmul.f32 1.442695, %v2530_v40  ;;  %1712 = vadd.xlane.f32.xlu1 %v1711_v30  ;;  %v2533_v24 = vadd.f32 -2.0, %v1163_v31  ;;  %v1715_v47 = vadd.f32 %v3053_v33, %v1714_v20 }
 0x2b0   : > { %v1165_v39 = vpop.f32.mrb[23].mxu1  ;;  %v3063_v42 = vpop.eup %3062  ;;  %v2532_v8 = vadd.f32 -2.0, %v972_v21  ;;  %3084 = vpow2.f32 %v1480_v41  ;;  %v1484_v46 = vmul.f32 1.442695, %v2531_v38 }
 0x2b1   : > { %v3065_v43 = vpop.eup %3064  ;;  %v2534_v45 = vadd.f32 -2.0, %v1165_v39  ;;  %3086 = vpow2.f32 %v1482_v44  ;;  %v1488_v50 = vmul.f32 1.442695, %v2533_v24  ;;  %v1716_v55 = vadd.f32 %v3057_v2, %v1715_v47  ;;  %v976_v49 = vpop.f32.mrb[24].mxu0 }
 0x2b2   : > { %v3067_v25 = vpop.eup %3066  ;;  %v1486_v9 = vmul.f32 1.442695, %v2532_v8  ;;  %v1719_v51 = vadd.f32 %v3065_v43, %v3059_v27  ;;  %3088 = vpow2.f32 %v1478_v35  ;;  %v2535_v58 = vadd.f32 -2.0, %v976_v49  ;;  %v1169_v59 = vpop.f32.mrb[24].mxu1 }
 0x2b3   : > { %v3069_v54 = vpop.eup %3068  ;;  %v1490_v48 = vmul.f32 1.442695, %v2534_v45  ;;  %3090 = vpow2.f32 %v1484_v46  ;;  %v978_v52 = vpop.f32.mrb[25].mxu0  ;;  %1717 = vadd.xlane.f32.xlu0 %v1716_v55  ;;  %v2537_v53 = vadd.f32 -2.0, %v1169_v59 }
 0x2b4   : > { %v3071_v28 = vpop.eup %3070  ;;  %v1720_v12 = vadd.f32 %v3061_v34, %v1719_v51  ;;  %3092 = vpow2.f32 %v1488_v50  ;;  %v1171_v56 = vpop.f32.mrb[25].mxu1  ;;  %v2536_v57 = vadd.f32 -2.0, %v978_v52  ;;  %v1492_v63 = vmul.f32 1.442695, %v2535_v58 }
 0x2b5   : > { %v3073_v62 = vpop.eup %3072  ;;  %v980_v60 = vpop.f32.mrb[26].mxu0  ;;  %v1724_v61 = vadd.f32 %v3071_v28, %v3067_v25  ;;  %3094 = vpow2.f32 %v1486_v9  ;;  %v2538_v3 = vadd.f32 -2.0, %v1171_v56  ;;  %v1496_v7 = vmul.f32 1.442695, %v2537_v53 }
 0x2b6   : > { %v3075_v29 = vpop.eup %3074  ;;  %v1721_v4 = vadd.f32 %v3063_v42, %v1720_v12  ;;  %v1173_v13 = vpop.f32.mrb[26].mxu1  ;;  %3096 = vpow2.f32 %v1490_v48  ;;  %v1494_v10 = vmul.f32 1.442695, %v2536_v57  ;;  %v2539_v11 = vadd.f32 -2.0, %v980_v60 }
 0x2b7   : > { %v982_v6 = vpop.f32.mrb[27].mxu0  ;;  %v3077_v32 = vpop.eup %3076  ;;  %3098 = vpow2.f32 %v1492_v63  ;;  %v1498_v16 = vmul.f32 1.442695, %v2538_v3  ;;  %v2541_v15 = vadd.f32 -2.0, %v1173_v13  ;;  %v1725_v17 = vadd.f32 %v3069_v54, %v1724_v61 }
 0x2b8   : > { %v1175_v14 = vpop.f32.mrb[27].mxu1  ;;  %v3079_v33 = vpop.eup %3078  ;;  %1722 = vadd.xlane.f32.xlu1 %v1721_v4  ;;  %v2540_v18 = vadd.f32 -2.0, %v982_v6  ;;  %3100 = vpow2.f32 %v1496_v7  ;;  %v1500_v22 = vmul.f32 1.442695, %v2539_v11 }
 0x2b9   : > { %v3081_v19 = vpop.eup %3080  ;;  %v2542_v36 = vadd.f32 -2.0, %v1175_v14  ;;  %3102 = vpow2.f32 %v1498_v16  ;;  %v1504_v2 = vmul.f32 1.442695, %v2541_v15  ;;  %v1726_v20 = vadd.f32 %v3073_v62, %v1725_v17  ;;  %v986_v27 = vpop.f32.mrb[28].mxu0 }
 0x2ba   : > { %v3083_v0 = vpop.eup %3082  ;;  %v1502_v23 = vmul.f32 1.442695, %v2540_v18  ;;  %v1729_v37 = vadd.f32 %v3081_v19, %v3075_v29  ;;  %3104 = vpow2.f32 %v1494_v10  ;;  %v2543_v40 = vadd.f32 -2.0, %v986_v27  ;;  %v1179_v30 = vpop.f32.mrb[28].mxu1 }
 0x2bb   : > { %v3085_v26 = vpop.eup %3084  ;;  %v1506_v1 = vmul.f32 1.442695, %v2542_v36  ;;  %3106 = vpow2.f32 %v1500_v22  ;;  %v988_v21 = vpop.f32.mrb[29].mxu0  ;;  %1727 = vadd.xlane.f32.xlu0 %v1726_v20  ;;  %v2545_v41 = vadd.f32 -2.0, %v1179_v30 }
 0x2bc   : > { %v3087_v5 = vpop.eup %3086  ;;  %v1730_v31 = vadd.f32 %v3077_v32, %v1729_v37  ;;  %3108 = vpow2.f32 %v1504_v2  ;;  %v1181_v35 = vpop.f32.mrb[29].mxu1  ;;  %v2544_v38 = vadd.f32 -2.0, %v988_v21  ;;  %v1508_v44 = vmul.f32 1.442695, %v2543_v40 }
 0x2bd   : > { %v3089_v34 = vpop.eup %3088  ;;  %v990_v39 = vpop.f32.mrb[30].mxu0  ;;  %3110 = vpow2.f32 %v1502_v23  ;;  %v2546_v24 = vadd.f32 -2.0, %v1181_v35  ;;  %v1512_v47 = vmul.f32 1.442695, %v2545_v41 }
 0x2be   : > { %v3091_v42 = vpop.eup %3090  ;;  %v1731_v8 = vadd.f32 %v3079_v33, %v1730_v31  ;;  %v1183_v43 = vpop.f32.mrb[30].mxu1  ;;  %3112 = vpow2.f32 %v1506_v1  ;;  %v1510_v25 = vmul.f32 1.442695, %v2544_v38  ;;  %v2547_v50 = vadd.f32 -2.0, %v990_v39 }
 0x2bf   : > { %v992_v46 = vpop.f32.mrb[31].mxu0  ;;  %v3093_v45 = vpop.eup %3092  ;;  %3114 = vpow2.f32 %v1508_v44  ;;  %v1514_v54 = vmul.f32 1.442695, %v2546_v24  ;;  %v2549_v48 = vadd.f32 -2.0, %v1183_v43  ;;  %v1734_v59 = vadd.f32 %v3089_v34, %v3083_v0 }
 0x2c0   : > { %v1185_v9 = vpop.f32.mrb[31].mxu1  ;;  %v3095_v51 = vpop.eup %3094  ;;  %1732 = vadd.xlane.f32.xlu1 %v1731_v8  ;;  %v2548_v55 = vadd.f32 -2.0, %v992_v46  ;;  %3116 = vpow2.f32 %v1512_v47  ;;  %v1516_v28 = vmul.f32 1.442695, %v2547_v50 }
 0x2c1   : > { %v3097_v49 = vpop.eup %3096  ;;  %v2550_v58 = vadd.f32 -2.0, %v1185_v9  ;;  %3118 = vpow2.f32 %v1514_v54  ;;  %v1520_v52 = vmul.f32 1.442695, %v2549_v48  ;;  %v1739_v53 = vadd.f32 %v3095_v51, %v3091_v42  ;;  %v996_v61 = vpop.f32.mrb[32].mxu0 }
 0x2c2   : > { %v3099_v12 = vpop.eup %3098  ;;  %v1518_v62 = vmul.f32 1.442695, %v2548_v55  ;;  %3120 = vpow2.f32 %v1510_v25  ;;  %v1735_v60 = vadd.f32 %v3085_v26, %v1734_v59  ;;  %v2551_v63 = vadd.f32 -2.0, %v996_v61  ;;  %v1189_v3 = vpop.f32.mrb[32].mxu1 }
 0x2c3   : > { %v3101_v56 = vpop.eup %3100  ;;  %v1522_v57 = vmul.f32 1.442695, %v2550_v58  ;;  %3122 = vpow2.f32 %v1516_v28  ;;  %v1740_v4 = vadd.f32 %v3093_v45, %v1739_v53  ;;  %v998_v13 = vpop.f32.mrb[33].mxu0  ;;  %v2553_v7 = vadd.f32 -2.0, %v1189_v3 }
 0x2c4   : > { %v3103_v29 = vpop.eup %3102  ;;  %3124 = vpow2.f32 %v1520_v52  ;;  %v1736_v32 = vadd.f32 %v3087_v5, %v1735_v60  ;;  %v1191_v10 = vpop.f32.mrb[33].mxu1  ;;  %v2552_v11 = vadd.f32 -2.0, %v998_v13  ;;  %v1524_v16 = vmul.f32 1.442695, %v2551_v63 }
 0x2c5   : > { %v3105_v6 = vpop.eup %3104  ;;  %v1000_v14 = vpop.f32.mrb[34].mxu0  ;;  %3126 = vpow2.f32 %v1518_v62  ;;  %v2554_v15 = vadd.f32 -2.0, %v1191_v10  ;;  %v1741_v18 = vadd.f32 %v3097_v49, %v1740_v4  ;;  %v1528_v17 = vmul.f32 1.442695, %v2553_v7 }
 0x2c6   : > { %v3107_v33 = vpop.eup %3106  ;;  %v1193_v19 = vpop.f32.mrb[34].mxu1  ;;  %3128 = vpow2.f32 %v1522_v57  ;;  %1737 = vadd.xlane.f32.xlu0 %v1736_v32  ;;  %v1526_v0 = vmul.f32 1.442695, %v2552_v11  ;;  %v2555_v2 = vadd.f32 -2.0, %v1000_v14  ;;  %v1744_v30 = vadd.f32 %v3105_v6, %v3099_v12 }
 0x2c7   : > { %v1002_v22 = vpop.f32.mrb[35].mxu0  ;;  %v3109_v36 = vpop.eup %3108  ;;  %3130 = vpow2.f32 %v1524_v16  ;;  %v1530_v26 = vmul.f32 1.442695, %v2554_v15  ;;  %1742 = vadd.xlane.f32.xlu1 %v1741_v18  ;;  %v2557_v1 = vadd.f32 -2.0, %v1193_v19 }
 0x2c8   : > { %v1195_v23 = vpop.f32.mrb[35].mxu1  ;;  %v3111_v37 = vpop.eup %3110  ;;  %v2556_v20 = vadd.f32 -2.0, %v1002_v22  ;;  %3132 = vpow2.f32 %v1528_v17  ;;  %v1532_v5 = vmul.f32 1.442695, %v2555_v2  ;;  %v1745_v39 = vadd.f32 %v3101_v56, %v1744_v30 }
 0x2c9   : > { %v3113_v27 = vpop.eup %3112  ;;  %v2558_v40 = vadd.f32 -2.0, %v1195_v23  ;;  %3134 = vpow2.f32 %v1530_v26  ;;  %v1536_v21 = vmul.f32 1.442695, %v2557_v1  ;;  %v1749_v41 = vadd.f32 %v3111_v37, %v3107_v33  ;;  %v1006_v42 = vpop.f32.mrb[36].mxu0 }
 0x2ca   : > { %v3115_v31 = vpop.eup %3114  ;;  %v1534_v34 = vmul.f32 1.442695, %v2556_v20  ;;  %3136 = vpow2.f32 %v1526_v0  ;;  %v2559_v24 = vadd.f32 -2.0, %v1006_v42  ;;  %v1199_v8 = vpop.f32.mrb[36].mxu1  ;;  %v1746_v47 = vadd.f32 %v3103_v29, %v1745_v39 }
 0x2cb   : > { %v3117_v35 = vpop.eup %3116  ;;  %v1538_v38 = vmul.f32 1.442695, %v2558_v40  ;;  %3138 = vpow2.f32 %v1532_v5  ;;  %v1750_v43 = vadd.f32 %v3109_v36, %v1749_v41  ;;  %v1008_v46 = vpop.f32.mrb[37].mxu0  ;;  %v2561_v25 = vadd.f32 -2.0, %v1199_v8 }
 0x2cc   : > { %v3119_v44 = vpop.eup %3118  ;;  %3140 = vpow2.f32 %v1536_v21  ;;  %v1201_v50 = vpop.f32.mrb[37].mxu1  ;;  %v2560_v9 = vadd.f32 -2.0, %v1008_v46  ;;  %v1540_v48 = vmul.f32 1.442695, %v2559_v24  ;;  %1747 = vadd.xlane.f32.xlu0 %v1746_v47 }
 0x2cd   : > { %v3121_v45 = vpop.eup %3120  ;;  %v1010_v51 = vpop.f32.mrb[38].mxu0  ;;  %3142 = vpow2.f32 %v1534_v34  ;;  %v2562_v55 = vadd.f32 -2.0, %v1201_v50  ;;  %v1751_v49 = vadd.f32 %v3113_v27, %v1750_v43  ;;  %v1544_v12 = vmul.f32 1.442695, %v2561_v25 }
 0x2ce   : > { %v3123_v54 = vpop.eup %3122  ;;  %v1203_v28 = vpop.f32.mrb[38].mxu1  ;;  %3144 = vpow2.f32 %v1538_v38  ;;  %v1542_v52 = vmul.f32 1.442695, %v2560_v9  ;;  %v2563_v62 = vadd.f32 -2.0, %v1010_v51  ;;  %v1754_v4 = vadd.f32 %v3121_v45, %v3115_v31 }
 0x2cf   : > { %v1012_v58 = vpop.f32.mrb[39].mxu0  ;;  %v3125_v59 = vpop.eup %3124  ;;  %3146 = vpow2.f32 %v1540_v48  ;;  %v1546_v57 = vmul.f32 1.442695, %v2562_v55  ;;  %1752 = vadd.xlane.f32.xlu1 %v1751_v49  ;;  %v2565_v60 = vadd.f32 -2.0, %v1203_v28 }
 0x2d0   : > { %v1205_v53 = vpop.f32.mrb[39].mxu1  ;;  %v3127_v56 = vpop.eup %3126  ;;  %v2564_v61 = vadd.f32 -2.0, %v1012_v58  ;;  %3148 = vpow2.f32 %v1544_v12  ;;  %v1548_v63 = vmul.f32 1.442695, %v2563_v62  ;;  %v1755_v14 = vadd.f32 %v3117_v35, %v1754_v4 }
 0x2d1   : > { %v3129_v29 = vpop.eup %3128  ;;  %v2566_v3 = vadd.f32 -2.0, %v1205_v53  ;;  %3150 = vpow2.f32 %v1546_v57  ;;  %v1552_v6 = vmul.f32 1.442695, %v2565_v60  ;;  %v1759_v7 = vadd.f32 %v3127_v56, %v3123_v54  ;;  %v1016_v33 = vpop.f32.mrb[40].mxu0 }
 0x2d2   : > { %v3131_v13 = vpop.eup %3130  ;;  %v1550_v32 = vmul.f32 1.442695, %v2564_v61  ;;  %3152 = vpow2.f32 %v1542_v52  ;;  %v2567_v15 = vadd.f32 -2.0, %v1016_v33  ;;  %v1209_v18 = vpop.f32.mrb[40].mxu1  ;;  %v1756_v17 = vadd.f32 %v3119_v44, %v1755_v14 }
 0x2d3   : > { %v3133_v10 = vpop.eup %3132  ;;  %v1554_v11 = vmul.f32 1.442695, %v2566_v3  ;;  %3154 = vpow2.f32 %v1548_v63  ;;  %v1760_v19 = vadd.f32 %v3125_v59, %v1759_v7  ;;  %v1018_v22 = vpop.f32.mrb[41].mxu0  ;;  %v2569_v0 = vadd.f32 -2.0, %v1209_v18 }
 0x2d4   : > { %v3135_v16 = vpop.eup %3134  ;;  %3156 = vpow2.f32 %v1552_v6  ;;  %v1211_v2 = vpop.f32.mrb[41].mxu1  ;;  %v2568_v23 = vadd.f32 -2.0, %v1018_v22  ;;  %v1556_v1 = vmul.f32 1.442695, %v2567_v15  ;;  %1757 = vadd.xlane.f32.xlu0 %v1756_v17 }
 0x2d5   : > { %v3137_v36 = vpop.eup %3136  ;;  %v1020_v37 = vpop.f32.mrb[42].mxu0  ;;  %3158 = vpow2.f32 %v1550_v32  ;;  %v2570_v20 = vadd.f32 -2.0, %v1211_v2  ;;  %v1761_v27 = vadd.f32 %v3129_v29, %v1760_v19  ;;  %v1560_v31 = vmul.f32 1.442695, %v2569_v0 }
 0x2d6   : > { %v3139_v26 = vpop.eup %3138  ;;  %v1213_v5 = vpop.f32.mrb[42].mxu1  ;;  %3160 = vpow2.f32 %v1554_v11  ;;  %v1558_v21 = vmul.f32 1.442695, %v2568_v23  ;;  %v2571_v34 = vadd.f32 -2.0, %v1020_v37  ;;  %v1764_v43 = vadd.f32 %v3137_v36, %v3131_v13 }
 0x2d7   : > { %v1022_v40 = vpop.f32.mrb[43].mxu0  ;;  %v3141_v30 = vpop.eup %3140  ;;  %3162 = vpow2.f32 %v1556_v1  ;;  %v1562_v38 = vmul.f32 1.442695, %v2570_v20  ;;  %1762 = vadd.xlane.f32.xlu1 %v1761_v27  ;;  %v2573_v39 = vadd.f32 -2.0, %v1213_v5 }
 0x2d8   : > { %v1215_v41 = vpop.f32.mrb[43].mxu1  ;;  %v3143_v35 = vpop.eup %3142  ;;  %v2572_v42 = vadd.f32 -2.0, %v1022_v40  ;;  %3164 = vpow2.f32 %v1560_v31  ;;  %v1564_v24 = vmul.f32 1.442695, %v2571_v34  ;;  %v1765_v51 = vadd.f32 %v3133_v10, %v1764_v43 }
 0x2d9   : > { %v3145_v44 = vpop.eup %3144  ;;  %v2574_v8 = vadd.f32 -2.0, %v1215_v41  ;;  %3166 = vpow2.f32 %v1562_v38  ;;  %v1568_v45 = vmul.f32 1.442695, %v2573_v39  ;;  %v1769_v25 = vadd.f32 %v3143_v35, %v3139_v26  ;;  %v1026_v54 = vpop.f32.mrb[44].mxu0 }
 0x2da   : > { %v3147_v46 = vpop.eup %3146  ;;  %v1566_v47 = vmul.f32 1.442695, %v2572_v42  ;;  %3168 = vpow2.f32 %v1558_v21  ;;  %v2575_v55 = vadd.f32 -2.0, %v1026_v54  ;;  %v1219_v49 = vpop.f32.mrb[44].mxu1  ;;  %v1766_v12 = vadd.f32 %v3135_v16, %v1765_v51 }
 0x2db   : > { %v3149_v50 = vpop.eup %3148  ;;  %v1570_v9 = vmul.f32 1.442695, %v2574_v8  ;;  %3170 = vpow2.f32 %v1564_v24  ;;  %v1770_v28 = vadd.f32 %v3141_v30, %v1769_v25  ;;  %v1028_v58 = vpop.f32.mrb[45].mxu0  ;;  %v2577_v52 = vadd.f32 -2.0, %v1219_v49 }
 0x2dc   : > { %v3151_v48 = vpop.eup %3150  ;;  %3172 = vpow2.f32 %v1568_v45  ;;  %v1221_v62 = vpop.f32.mrb[45].mxu1  ;;  %v2576_v53 = vadd.f32 -2.0, %v1028_v58  ;;  %v1572_v60 = vmul.f32 1.442695, %v2575_v55  ;;  %1767 = vadd.xlane.f32.xlu0 %v1766_v12 }
 0x2dd   : > { %v3153_v59 = vpop.eup %3152  ;;  %v1030_v56 = vpop.f32.mrb[46].mxu0  ;;  %3174 = vpow2.f32 %v1566_v47  ;;  %v2578_v61 = vadd.f32 -2.0, %v1221_v62  ;;  %v1771_v29 = vadd.f32 %v3145_v44, %v1770_v28  ;;  %v1576_v13 = vmul.f32 1.442695, %v2577_v52 }
 0x2de   : > { %v3155_v57 = vpop.eup %3154  ;;  %v1223_v63 = vpop.f32.mrb[46].mxu1  ;;  %3176 = vpow2.f32 %v1570_v9  ;;  %v1574_v6 = vmul.f32 1.442695, %v2576_v53  ;;  %v2579_v32 = vadd.f32 -2.0, %v1030_v56  ;;  %v1774_v19 = vadd.f32 %v3153_v59, %v3147_v46 }
 0x2df   : > { %v1032_v3 = vpop.f32.mrb[47].mxu0  ;;  %v3157_v4 = vpop.eup %3156  ;;  %3178 = vpow2.f32 %v1572_v60  ;;  %v1578_v11 = vmul.f32 1.442695, %v2578_v61  ;;  %1772 = vadd.xlane.f32.xlu1 %v1771_v29  ;;  %v2581_v14 = vadd.f32 -2.0, %v1223_v63 }
 0x2e0   : > { %v1225_v7 = vpop.f32.mrb[47].mxu1  ;;  %v3159_v10 = vpop.eup %3158  ;;  %v2580_v33 = vadd.f32 -2.0, %v1032_v3  ;;  %3180 = vpow2.f32 %v1576_v13  ;;  %v1580_v15 = vmul.f32 1.442695, %v2579_v32  ;;  %v1775_v37 = vadd.f32 %v3149_v50, %v1774_v19 }
 0x2e1   : > { %v3161_v16 = vpop.eup %3160  ;;  %v2582_v18 = vadd.f32 -2.0, %v1225_v7  ;;  %3182 = vpow2.f32 %v1578_v11  ;;  %v1584_v36 = vmul.f32 1.442695, %v2581_v14  ;;  %v1779_v0 = vadd.f32 %v3159_v10, %v3155_v57  ;;  %v1036_v26 = vpop.f32.mrb[48].mxu0 }
 0x2e2   : > { %v3163_v22 = vpop.eup %3162  ;;  %v1582_v17 = vmul.f32 1.442695, %v2580_v33  ;;  %3184 = vpow2.f32 %v1574_v6  ;;  %v2583_v20 = vadd.f32 -2.0, %v1036_v26  ;;  %v1229_v27 = vpop.f32.mrb[48].mxu1  ;;  %v1776_v31 = vadd.f32 %v3151_v48, %v1775_v37 }
 0x2e3   : > { %v3165_v2 = vpop.eup %3164  ;;  %v1586_v23 = vmul.f32 1.442695, %v2582_v18  ;;  %3186 = vpow2.f32 %v1580_v15  ;;  %v1780_v5 = vadd.f32 %v3157_v4, %v1779_v0  ;;  %v1038_v40 = vpop.f32.mrb[49].mxu0  ;;  %v2585_v21 = vadd.f32 -2.0, %v1229_v27 }
 0x2e4   : > { %v3167_v1 = vpop.eup %3166  ;;  %3188 = vpow2.f32 %v1584_v36  ;;  %v1231_v34 = vpop.f32.mrb[49].mxu1  ;;  %v2584_v41 = vadd.f32 -2.0, %v1038_v40  ;;  %v1588_v39 = vmul.f32 1.442695, %v2583_v20  ;;  %1777 = vadd.xlane.f32.xlu0 %v1776_v31 }
 0x2e5   : > { %v3169_v30 = vpop.eup %3168  ;;  %v1040_v35 = vpop.f32.mrb[50].mxu0  ;;  %3190 = vpow2.f32 %v1582_v17  ;;  %v2586_v42 = vadd.f32 -2.0, %v1231_v34  ;;  %v1781_v44 = vadd.f32 %v3161_v16, %v1780_v5  ;;  %v1592_v46 = vmul.f32 1.442695, %v2585_v21 }
 0x2e6   : > { %v3171_v38 = vpop.eup %3170  ;;  %v1233_v24 = vpop.f32.mrb[50].mxu1  ;;  %3192 = vpow2.f32 %v1586_v23  ;;  %v1590_v45 = vmul.f32 1.442695, %v2584_v41  ;;  %v2587_v47 = vadd.f32 -2.0, %v1040_v35  ;;  %v1784_v28 = vadd.f32 %v3169_v30, %v3163_v22 }
 0x2e7   : > { %v1042_v8 = vpop.f32.mrb[51].mxu0  ;;  %v3173_v43 = vpop.eup %3172  ;;  %3194 = vpow2.f32 %v1588_v39  ;;  %v1594_v9 = vmul.f32 1.442695, %v2586_v42  ;;  %1782 = vadd.xlane.f32.xlu1 %v1781_v44  ;;  %v2589_v51 = vadd.f32 -2.0, %v1233_v24 }
 0x2e8   : > { %v1235_v25 = vpop.f32.mrb[51].mxu1  ;;  %v3175_v50 = vpop.eup %3174  ;;  %v2588_v54 = vadd.f32 -2.0, %v1042_v8  ;;  %3196 = vpow2.f32 %v1592_v46  ;;  %v1596_v55 = vmul.f32 1.442695, %v2587_v47  ;;  %v1785_v56 = vadd.f32 %v3165_v2, %v1784_v28 }
 0x2e9   : > { %v3177_v48 = vpop.eup %3176  ;;  %v2590_v49 = vadd.f32 -2.0, %v1235_v25  ;;  %3198 = vpow2.f32 %v1594_v9  ;;  %v1600_v59 = vmul.f32 1.442695, %v2589_v51  ;;  %v1789_v52 = vadd.f32 %v3175_v50, %v3171_v38  ;;  %v1046_v57 = vpop.f32.mrb[52].mxu0 }
 0x2ea   : > { %v3179_v58 = vpop.eup %3178  ;;  %v1598_v12 = vmul.f32 1.442695, %v2588_v54  ;;  %3200 = vpow2.f32 %v1590_v45  ;;  %v2591_v61 = vadd.f32 -2.0, %v1046_v57  ;;  %v1239_v29 = vpop.f32.mrb[52].mxu1  ;;  %v1786_v13 = vadd.f32 %v3167_v1, %v1785_v56 }
 0x2eb   : > { %v3181_v62 = vpop.eup %3180  ;;  %v1602_v53 = vmul.f32 1.442695, %v2590_v49  ;;  %3202 = vpow2.f32 %v1596_v55  ;;  %v1790_v63 = vadd.f32 %v3173_v43, %v1789_v52  ;;  %v1048_v3 = vpop.f32.mrb[53].mxu0  ;;  %v2593_v6 = vadd.f32 -2.0, %v1239_v29 }
 0x2ec   : > { %v3183_v60 = vpop.eup %3182  ;;  %3204 = vpow2.f32 %v1600_v59  ;;  %v1241_v32 = vpop.f32.mrb[53].mxu1  ;;  %v2592_v7 = vadd.f32 -2.0, %v1048_v3  ;;  %v1604_v14 = vmul.f32 1.442695, %v2591_v61  ;;  %1787 = vadd.xlane.f32.xlu0 %v1786_v13 }
 0x2ed   : > { %v3185_v4 = vpop.eup %3184  ;;  %v1050_v10 = vpop.f32.mrb[54].mxu0  ;;  %3206 = vpow2.f32 %v1598_v12  ;;  %v2594_v33 = vadd.f32 -2.0, %v1241_v32  ;;  %v1791_v16 = vadd.f32 %v3177_v48, %v1790_v63  ;;  %v1608_v22 = vmul.f32 1.442695, %v2593_v6 }
 0x2ee   : > { %v3187_v11 = vpop.eup %3186  ;;  %v1243_v15 = vpop.f32.mrb[54].mxu1  ;;  %3208 = vpow2.f32 %v1602_v53  ;;  %v1606_v36 = vmul.f32 1.442695, %v2592_v7  ;;  %v2595_v17 = vadd.f32 -2.0, %v1050_v10  ;;  %v1794_v5 = vadd.f32 %v3185_v4, %v3179_v58 }
 0x2ef   : > { %v1052_v18 = vpop.f32.mrb[55].mxu0  ;;  %v3189_v19 = vpop.eup %3188  ;;  %3210 = vpow2.f32 %v1604_v14  ;;  %v1610_v23 = vmul.f32 1.442695, %v2594_v33  ;;  %1792 = vadd.xlane.f32.xlu1 %v1791_v16  ;;  %v2597_v37 = vadd.f32 -2.0, %v1243_v15 }
 0x2f0   : > { %v1245_v0 = vpop.f32.mrb[55].mxu1  ;;  %v3191_v2 = vpop.eup %3190  ;;  %v2596_v26 = vadd.f32 -2.0, %v1052_v18  ;;  %3212 = vpow2.f32 %v1608_v22  ;;  %v1612_v20 = vmul.f32 1.442695, %v2595_v17  ;;  %v1795_v35 = vadd.f32 %v3181_v62, %v1794_v5 }
 0x2f1   : > { %v3193_v1 = vpop.eup %3192  ;;  %v2598_v27 = vadd.f32 -2.0, %v1245_v0  ;;  %3214 = vpow2.f32 %v1610_v23  ;;  %v1616_v30 = vmul.f32 1.442695, %v2597_v37  ;;  %v1799_v21 = vadd.f32 %v3191_v2, %v3187_v11  ;;  %v1056_v38 = vpop.f32.mrb[56].mxu0 }
 0x2f2   : > { %v3195_v40 = vpop.eup %3194  ;;  %v1614_v31 = vmul.f32 1.442695, %v2596_v26  ;;  %3216 = vpow2.f32 %v1606_v36  ;;  %v2599_v42 = vadd.f32 -2.0, %v1056_v38  ;;  %v1249_v44 = vpop.f32.mrb[56].mxu1  ;;  %v1796_v46 = vadd.f32 %v3183_v60, %v1795_v35 }
 0x2f3   : > { %v3197_v34 = vpop.eup %3196  ;;  %v1618_v41 = vmul.f32 1.442695, %v2598_v27  ;;  %3218 = vpow2.f32 %v1612_v20  ;;  %v1800_v24 = vadd.f32 %v3189_v19, %v1799_v21  ;;  %v1058_v8 = vpop.f32.mrb[57].mxu0  ;;  %v2601_v45 = vadd.f32 -2.0, %v1249_v44 }
 0x2f4   : > { %v3199_v39 = vpop.eup %3198  ;;  %3220 = vpow2.f32 %v1616_v30  ;;  %v1251_v47 = vpop.f32.mrb[57].mxu1  ;;  %v2600_v25 = vadd.f32 -2.0, %v1058_v8  ;;  %v1620_v51 = vmul.f32 1.442695, %v2599_v42  ;;  %1797 = vadd.xlane.f32.xlu0 %v1796_v46 }
 0x2f5   : > { %v3201_v43 = vpop.eup %3200  ;;  %v1060_v50 = vpop.f32.mrb[58].mxu0  ;;  %3222 = vpow2.f32 %v1614_v31  ;;  %v2602_v54 = vadd.f32 -2.0, %v1251_v47  ;;  %v1801_v48 = vadd.f32 %v3193_v1, %v1800_v24  ;;  %v1624_v58 = vmul.f32 1.442695, %v2601_v45 }
 0x2f6   : > { %v3203_v9 = vpop.eup %3202  ;;  %v1253_v55 = vpop.f32.mrb[58].mxu1  ;;  %3224 = vpow2.f32 %v1618_v41  ;;  %v1622_v59 = vmul.f32 1.442695, %v2600_v25  ;;  %v2603_v12 = vadd.f32 -2.0, %v1060_v50  ;;  %v1804_v63 = vadd.f32 %v3201_v43, %v3195_v40 }
 0x2f7   : > { %v1062_v49 = vpop.f32.mrb[59].mxu0  ;;  %v3205_v28 = vpop.eup %3204  ;;  %3226 = vpow2.f32 %v1620_v51  ;;  %1802 = vadd.xlane.f32.xlu1 %v1801_v48  ;;  %v2605_v53 = vadd.f32 -2.0, %v1253_v55  ;;  %v1626_v60 = vmul.f32 1.442695, %v2602_v54 }
 0x2f8   : > { %v1255_v52 = vpop.f32.mrb[59].mxu1  ;;  %v3207_v62 = vpop.eup %3206  ;;  %v2604_v56 = vadd.f32 -2.0, %v1062_v49  ;;  %v1628_v61 = vmul.f32 1.442695, %v2603_v12  ;;  %3228 = vpow2.f32 %v1624_v58  ;;  %v1805_v7 = vadd.f32 %v3197_v34, %v1804_v63 }
 0x2f9   : > { %v3209_v57 = vpop.eup %3208  ;;  %v2606_v29 = vadd.f32 -2.0, %v1255_v52  ;;  %v1809_v13 = vadd.f32 %v3207_v62, %v3203_v9  ;;  %3230 = vpow2.f32 %v1622_v59  ;;  %v1632_v32 = vmul.f32 1.442695, %v2605_v53  ;;  %v1066_v10 = vpop.f32.mrb[60].mxu0 }
 0x2fa   : > { %v3211_v3 = vpop.eup %3210  ;;  %v1630_v4 = vmul.f32 1.442695, %v2604_v56  ;;  %3232 = vpow2.f32 %v1628_v61  ;;  %v2607_v33 = vadd.f32 -2.0, %v1066_v10  ;;  %v1259_v16 = vpop.f32.mrb[60].mxu1  ;;  %v1806_v22 = vadd.f32 %v3199_v39, %v1805_v7 }
 0x2fb   : > { %v3213_v6 = vpop.eup %3212  ;;  %v1634_v14 = vmul.f32 1.442695, %v2606_v29  ;;  %v1810_v15 = vadd.f32 %v3205_v28, %v1809_v13  ;;  %v1068_v18 = vpop.f32.mrb[61].mxu0  ;;  %3234 = vpow2.f32 %v1626_v60  ;;  %v2609_v36 = vadd.f32 -2.0, %v1259_v16  ;;  %v1652_v16 = vld [vmem:[#allocation3] sm:$0xff] }
 0x2fc   : > { %v3215_v11 = vpop.eup %3214  ;;  %v1261_v17 = vpop.f32.mrb[61].mxu1  ;;  %v2608_v0 = vadd.f32 -2.0, %v1068_v18  ;;  %3236 = vpow2.f32 %v1630_v4  ;;  %v1636_v37 = vmul.f32 1.442695, %v2607_v33  ;;  %1807 = vadd.xlane.f32.xlu0 %v1806_v22 }
 0x2fd   : > { %v3217_v19 = vpop.eup %3216  ;;  %v1070_v2 = vpop.f32.mrb[62].mxu0  ;;  %v2610_v26 = vadd.f32 -2.0, %v1261_v17  ;;  %v1811_v1 = vadd.f32 %v3209_v57, %v1810_v15  ;;  %3238 = vpow2.f32 %v1632_v32  ;;  %v1640_v40 = vmul.f32 1.442695, %v2609_v36  ;;  %v1654_v17 = vld [vmem:[#allocation3 + $0x10] sm:$0xff] }
 0x2fe   : > { %v3219_v23 = vpop.eup %3218  ;;  %v1263_v20 = vpop.f32.mrb[62].mxu1  ;;  %v1638_v30 = vmul.f32 1.442695, %v2608_v0  ;;  %v2611_v31 = vadd.f32 -2.0, %v1070_v2  ;;  %3240 = vpow2.f32 %v1634_v14  ;;  %v1814_v42 = vadd.f32 %v3217_v19, %v3211_v3  ;;  %v1653_v19 = vld [vmem:[#allocation3 + $0x8] sm:$0xff] }
 0x2ff   : > { %v1072_v27 = vpop.f32.mrb[63].mxu0  ;;  %v3221_v5 = vpop.eup %3220  ;;  %1812 = vadd.xlane.f32.xlu1 %v1811_v1  ;;  %v2613_v41 = vadd.f32 -2.0, %v1263_v20  ;;  %3242 = vpow2.f32 %v1636_v37  ;;  %v1642_v46 = vmul.f32 1.442695, %v2610_v26  ;;  %v1656_v1 = vld [vmem:[#allocation3 + $0x20] sm:$0xff] }
 0x300   : > { %v1265_v21 = vpop.f32.mrb[63].mxu1  ;;  %v3223_v34 = vpop.eup %3222  ;;  %v2612_v35 = vadd.f32 -2.0, %v1072_v27  ;;  %v1644_v39 = vmul.f32 1.442695, %v2611_v31  ;;  %3244 = vpow2.f32 %v1640_v40  ;;  %v1815_v45 = vadd.f32 %v3213_v6, %v1814_v42  ;;  %v1657_v27 = vld [vmem:[#allocation3 + $0x28] sm:$0xff]  ;;  %v1658_v31 = vld [vmem:[#allocation3 + $0x30] sm:$0xff] }
 0x301   : > { %v3225_v38 = vpop.eup %3224  ;;  %v2614_v8 = vadd.f32 -2.0, %v1265_v21  ;;  %v1819_v43 = vadd.f32 %v3223_v34, %v3219_v23  ;;  %3246 = vpow2.f32 %v1638_v30  ;;  %v1648_v25 = vmul.f32 1.442695, %v2613_v41  ;;  %v1655_v23 = vld [vmem:[#allocation3 + $0x18] sm:$0xff] }
 0x302   : > { %v3227_v44 = vpop.eup %3226  ;;  %v1646_v24 = vmul.f32 1.442695, %v2612_v35  ;;  %3248 = vpow2.f32 %v1644_v39  ;;  %v1816_v51 = vadd.f32 %v3215_v11, %v1815_v45  ;;  %v1659_v41 = vld [vmem:[#allocation3 + $0x38] sm:$0xff]  ;;  %v1660_v39 = vld [vmem:[#allocation3 + $0x40] sm:$0xff] }
 0x303   : > { %v3229_v47 = vpop.eup %3228  ;;  %v1820_v50 = vadd.f32 %v3221_v5, %v1819_v43  ;;  %v1650_v48 = vmul.f32 1.442695, %v2614_v8  ;;  %v1663_v45 = vld [vmem:[#allocation3 + $0x58] sm:$0xff] }
 0x304   : > { %v3231_v9 = vpop.eup %3230  ;;  %3250 = vpow2.f32 %v1646_v24  ;;  %1817 = vadd.xlane.f32.xlu0 %v1816_v51  ;;  %v1661_v24 = vld [vmem:[#allocation3 + $0x48] sm:$0xff]  ;;  %v1664_v51 = vld [vmem:[#allocation3 + $0x60] sm:$0xff] }
 0x305   : > { %v3233_v54 = vpop.eup %3232  ;;  %v1821_v55 = vadd.f32 %v3225_v38, %v1820_v50  ;;  %v1824_v49 = vadd.f32 %v3231_v9, %v3227_v44  ;;  %3252 = vpow2.f32 %v1642_v46  ;;  %v1662_v46 = vld [vmem:[#allocation3 + $0x50] sm:$0xff] }
 0x306   : > { %v3235_v28 = vpop.eup %3234  ;;  %3254 = vpow2.f32 %v1648_v25 }
 0x307   : > { %v3237_v58 = vpop.eup %3236  ;;  %1822 = vadd.xlane.f32.xlu1 %v1821_v55  ;;  %v1825_v59 = vadd.f32 %v3229_v47, %v1824_v49  ;;  %3256 = vpow2.f32 %v1650_v48 }
 0x308   : > { %v3239_v12 = vpop.eup %3238  ;;  %v1829_v52 = vadd.f32 %v3237_v58, %v3233_v54  ;;  %v1665_v54 = vld [vmem:[#allocation3 + $0x68] sm:$0xff]  ;;  %v1666_v58 = vld [vmem:[#allocation3 + $0x70] sm:$0xff] }
 0x309   : > { %v3241_v62 = vpop.eup %3240  ;;  %v1826_v53 = vadd.f32 %v3235_v28, %v1825_v59  ;;  %v1667_v59 = vld [vmem:[#allocation3 + $0x78] sm:$0xff] }
 0x30a   : > { %v3243_v56 = vpop.eup %3242  ;;  %v1830_v57 = vadd.f32 %v3239_v12, %v1829_v52 }
 0x30b   : > { %v3245_v60 = vpop.eup %3244  ;;  %1827 = vadd.xlane.f32.xlu0 %v1826_v53 }
 0x30c   : > { %v3247_v61 = vpop.eup %3246  ;;  %v1831_v29 = vadd.f32 %v3241_v62, %v1830_v57  ;;  %v1669_v57 = vld [vmem:[#allocation3 + $0x88] sm:$0xff] }
 0x30d   : > { %v3249_v63 = vpop.eup %3248  ;;  %v1834_v3 = vadd.f32 %v3247_v61, %v3243_v56  ;;  %v1668_v56 = vld [vmem:[#allocation3 + $0x80] sm:$0xff] }
 0x30e   : > { %1832 = vadd.xlane.f32.xlu1 %v1831_v29  ;;  %v3251_v4 = vpop.eup %3250 }
 0x30f   : > { %v1835_v13 = vadd.f32 %v3245_v60, %v1834_v3  ;;  %v3253_v6 = vpop.eup %3252  ;;  %v1839_v32 = vadd.f32 %v3251_v4, %v3249_v63  ;;  %v1670_v3 = vld [vmem:[#allocation3 + $0x90] sm:$0xff]  ;;  %v1671_v4 = vld [vmem:[#allocation3 + $0x98] sm:$0xff] }
 0x310   : > { %v3255_v7 = vpop.eup %3254 }
 0x311   : > { %v1836_v10 = vadd.f32 %v3253_v6, %v1835_v13  ;;  %v1840_v11 = vadd.f32 %v3255_v7, %v1839_v32  ;;  %v3257_v14 = vpop.eup %3256 }
 0x313   : > { %1837 = vadd.xlane.f32.xlu0 %v1836_v10  ;;  %v1841_v33 = vadd.f32 %v3257_v14, %v1840_v11  ;;  %v1672_v10 = vld [vmem:[#allocation3 + $0xa0] sm:$0xff]  ;;  %v1673_v11 = vld [vmem:[#allocation3 + $0xa8] sm:$0xff] }
 0x315   : > { %1842 = vadd.xlane.f32.xlu1 %v1841_v33 }
 0x328   : > { %v1688_v15 = vpop.xlane.xlu0 %1687 }
 0x329   : > { %v1844_v18 = vadd.f32 %v1688_v15, %v1652_v16 }
 0x32b   : > { %1877 = vst.msk [vmem:[#allocation3] sm:$0xff] %vm1876_vm1, %v1844_v18  ;;  %v1674_v18 = vld [vmem:[#allocation3 + $0xb0] sm:$0xff] }
 0x32c   : > { %v1693_v22 = vpop.xlane.xlu0 %1692 }
 0x32d   : > { %v1845_v36 = vadd.f32 %v1693_v22, %v1653_v19  ;;  %v1675_v19 = vld [vmem:[#allocation3 + $0xb8] sm:$0xff] }
 0x32f   : > { %1878 = vst.msk [vmem:[#allocation3 + $0x8] sm:$0xff] %vm1876_vm1, %v1845_v36  ;;  %v1698_v0 = vpop.xlane.xlu1 %1697 }
 0x330   : > { %v1846_v2 = vadd.f32 %v1698_v0, %v1654_v17 }
 0x332   : > { %1879 = vst.msk [vmem:[#allocation3 + $0x10] sm:$0xff] %vm1876_vm1, %v1846_v2  ;;  %v1676_v2 = vld [vmem:[#allocation3 + $0xc0] sm:$0xff] }
 0x335   : > { %v1703_v37 = vpop.xlane.xlu1 %1702 }
 0x336   : > { %v1847_v26 = vadd.f32 %v1703_v37, %v1655_v23  ;;  %v1677_v23 = vld [vmem:[#allocation3 + $0xc8] sm:$0xff] }
 0x338   : > { %1880 = vst.msk [vmem:[#allocation3 + $0x18] sm:$0xff] %vm1876_vm1, %v1847_v26 }
 0x339   : > { %v1708_v20 = vpop.xlane.xlu0 %1707 }
 0x33a   : > { %v1848_v5 = vadd.f32 %v1708_v20, %v1656_v1 }
 0x33c   : > { %v1713_v40 = vpop.xlane.xlu1 %1712  ;;  %1881 = vst.msk [vmem:[#allocation3 + $0x20] sm:$0xff] %vm1876_vm1, %v1848_v5  ;;  %v1679_v5 = vld [vmem:[#allocation3 + $0xd8] sm:$0xff] }
 0x33d   : > { %v1849_v30 = vadd.f32 %v1713_v40, %v1657_v27  ;;  %v1678_v27 = vld [vmem:[#allocation3 + $0xd0] sm:$0xff] }
 0x33f   : > { %1882 = vst.msk [vmem:[#allocation3 + $0x28] sm:$0xff] %vm1876_vm1, %v1849_v30 }
 0x340   : > { %v1718_v21 = vpop.xlane.xlu0 %1717 }
 0x341   : > { %v1850_v34 = vadd.f32 %v1718_v21, %v1658_v31 }
 0x343   : > { %1883 = vst.msk [vmem:[#allocation3 + $0x30] sm:$0xff] %vm1876_vm1, %v1850_v34  ;;  %v1680_v34 = vld [vmem:[#allocation3 + $0xe0] sm:$0xff] }
 0x345   : > { %v1723_v35 = vpop.xlane.xlu1 %1722 }
 0x346   : > { %v1851_v38 = vadd.f32 %v1723_v35, %v1659_v41 }
 0x348   : > { %1884 = vst.msk [vmem:[#allocation3 + $0x38] sm:$0xff] %vm1876_vm1, %v1851_v38  ;;  %v1728_v42 = vpop.xlane.xlu0 %1727  ;;  %v1681_v38 = vld [vmem:[#allocation3 + $0xe8] sm:$0xff] }
 0x349   : > { %v1852_v44 = vadd.f32 %v1728_v42, %v1660_v39 }
 0x34b   : > { %1885 = vst.msk [vmem:[#allocation3 + $0x40] sm:$0xff] %vm1876_vm1, %v1852_v44  ;;  %v1682_v44 = vld [vmem:[#allocation3 + $0xf0] sm:$0xff] }
 0x34d   : > { %v1733_v8 = vpop.xlane.xlu1 %1732 }
 0x34e   : > { %v1853_v43 = vadd.f32 %v1733_v8, %v1661_v24 }
 0x350   : > { %1886 = vst.msk [vmem:[#allocation3 + $0x48] sm:$0xff] %vm1876_vm1, %v1853_v43  ;;  %v1683_v43 = vld [vmem:[#allocation3 + $0xf8] sm:$0xff] }
 0x353   : > { %v1738_v47 = vpop.xlane.xlu0 %1737 }
 0x354   : > { %v1854_v25 = vadd.f32 %v1738_v47, %v1662_v46  ;;  %v1743_v50 = vpop.xlane.xlu1 %1742  ;;  %v1914_v47 = vld [vmem:[#allocation2 + $0x8] sm:$0xff] (!%p2615_p8) }
 0x355   : > { %v1855_v9 = vadd.f32 %v1743_v50, %v1663_v45  ;;  %v1913_v50 = vld [vmem:[#allocation2] sm:$0xff] (!%p2615_p8) }
 0x356   : > { %1887 = vst.msk [vmem:[#allocation3 + $0x50] sm:$0xff] %vm1876_vm1, %v1854_v25  ;;  %v2685_v25 = vld [vmem:[%s3809_s7 + $0x8] sm:$0xff] (!%p2615_p8)  }
 0x357   : > { %1888 = vst.msk [vmem:[#allocation3 + $0x58] sm:$0xff] %vm1876_vm1, %v1855_v9  ;;  %v1931_v9 = vunpack.c.l.bf16 (!%p2615_p8), %v1914_v47 }
 0x359   : > { %v1748_v48 = vpop.xlane.xlu0 %1747 }
 0x35a   : > { %v1856_v55 = vadd.f32 %v1748_v48, %v1664_v51  ;;  %v2627_v51 = vunpack.c.l.bf16 (!%p2615_p8), %v2685_v25  ;;  %v2622_v48 = vld [vmem:[%s3809_s7] sm:$0xff] (!%p2615_p8)  }
 0x35c   : > { %v1753_v49 = vpop.xlane.xlu1 %1752  ;;  %1889 = vst.msk [vmem:[#allocation3 + $0x60] sm:$0xff] %vm1876_vm1, %v1856_v55  ;;  %v1932_v55 = vunpack.c.h.bf16 (!%p2615_p8), %v1914_v47 }
 0x35d   : > { %v1857_v28 = vadd.f32 %v1753_v49, %v1665_v54  ;;  %v1929_v54 = vunpack.c.l.bf16 (!%p2615_p8), %v1913_v50  ;;  %v2623_v49 = vunpack.c.l.bf16 (!%p2615_p8), %v2622_v48 }
 0x35f   : > { %1890 = vst.msk [vmem:[#allocation3 + $0x68] sm:$0xff] %vm1876_vm1, %v1857_v28  ;;  %v2628_v28 = vunpack.c.h.bf16 (!%p2615_p8), %v2685_v25 }
 0x361   : > { %v1758_v12 = vpop.xlane.xlu0 %1757 }
 0x362   : > { %v1858_v52 = vadd.f32 %v1758_v12, %v1666_v58  ;;  %v1930_v58 = vunpack.c.h.bf16 (!%p2615_p8), %v1913_v50  ;;  %v1915_v12 = vld [vmem:[#allocation2 + $0x10] sm:$0xff] (!%p2615_p8) }
 0x364   : > { %v1763_v62 = vpop.xlane.xlu1 %1762  ;;  %1891 = vst.msk [vmem:[#allocation3 + $0x70] sm:$0xff] %vm1876_vm1, %v1858_v52  ;;  %v2686_v52 = vld [vmem:[%s3809_s7 + $0x10] sm:$0xff] (!%p2615_p8)  }
 0x365   : > { %v1859_v53 = vadd.f32 %v1763_v62, %v1667_v59  ;;  %v2624_v59 = vunpack.c.h.bf16 (!%p2615_p8), %v2622_v48  ;;  %v2027_v62 = vmul.f32 (!%p2615_p8), %v2627_v51, %v1931_v9  ;;  %v1922_v48 = vld [vmem:[#allocation2 + $0x48] sm:$0xff] (!%p2615_p8) }
 0x367   : > { %1892 = vst.msk [vmem:[#allocation3 + $0x78] sm:$0xff] %vm1876_vm1, %v1859_v53  ;;  %v2025_v53 = vmul.f32 (!%p2615_p8), %v2623_v49, %v1929_v54  ;;  %2061 = vadd.xlane.f32.xlu1 (!%p2615_p8), %v2027_v62  ;;  %v1923_v62 = vld [vmem:[#allocation2 + $0x50] sm:$0xff] (!%p2615_p8) }
 0x369   : > { %v1768_v60 = vpop.xlane.xlu0 %1767  ;;  %2057 = vadd.xlane.f32.xlu0 (!%p2615_p8), %v2025_v53  ;;  %v2694_v53 = vld [vmem:[%s3809_s7 + $0x50] sm:$0xff] (!%p2615_p8)  }
 0x36a   : > { %v1860_v61 = vadd.f32 %v1768_v60, %v1668_v56  ;;  %v2028_v56 = vmul.f32 (!%p2615_p8), %v2628_v28, %v1932_v55  ;;  %v2632_v60 = vunpack.c.h.bf16 (!%p2615_p8), %v2686_v52  ;;  %v2693_v55 = vld [vmem:[%s3809_s7 + $0x48] sm:$0xff] (!%p2615_p8)   ;;  %v1948_v28 = vunpack.c.h.bf16 (!%p2615_p8), %v1922_v48 }
 0x36c   : > { %v1773_v29 = vpop.xlane.xlu1 %1772  ;;  %1893 = vst.msk [vmem:[#allocation3 + $0x80] sm:$0xff] %vm1876_vm1, %v1860_v61  ;;  %v2026_v61 = vmul.f32 (!%p2615_p8), %v2624_v59, %v1930_v58  ;;  %2063 = vadd.xlane.f32.xlu1 (!%p2615_p8), %v2028_v56  ;;  %v2660_v58 = vunpack.c.h.bf16 (!%p2615_p8), %v2693_v55 }
 0x36d   : > { %v1861_v63 = vadd.f32 %v1773_v29, %v1669_v57  ;;  %v1934_v57 = vunpack.c.h.bf16 (!%p2615_p8), %v1915_v12  ;;  %v1933_v29 = vunpack.c.l.bf16 (!%p2615_p8), %v1915_v12  ;;  %v1947_v12 = vunpack.c.l.bf16 (!%p2615_p8), %v1922_v48  ;;  %v2128_v48 = vld [vmem:[#allocation3 + $0x38] sm:$0xff] (!%p2615_p8) }
 0x36e   : > { %2059 = vadd.xlane.f32.xlu0 (!%p2615_p8), %v2026_v61  ;;  %v2044_v56 = vmul.f32 (!%p2615_p8), %v2660_v58, %v1948_v28 }
 0x36f   : > { %1894 = vst.msk [vmem:[#allocation3 + $0x88] sm:$0xff] %vm1876_vm1, %v1861_v63  ;;  %v2631_v63 = vunpack.c.l.bf16 (!%p2615_p8), %v2686_v52  ;;  %v2659_v52 = vunpack.c.l.bf16 (!%p2615_p8), %v2693_v55 }
 0x371   : > { %v1778_v13 = vpop.xlane.xlu0 %1777  ;;  %v2043_v61 = vmul.f32 (!%p2615_p8), %v2659_v52, %v1947_v12 }
 0x372   : > { %v1862_v6 = vadd.f32 %v1778_v13, %v1670_v3  ;;  %v1916_v3 = vld [vmem:[#allocation2 + $0x18] sm:$0xff] (!%p2615_p8)  ;;  %v2030_v13 = vmul.f32 (!%p2615_p8), %v2632_v60, %v1934_v57  ;;  %v1950_v57 = vunpack.c.h.bf16 (!%p2615_p8), %v1923_v62  ;;  %v2664_v60 = vunpack.c.h.bf16 (!%p2615_p8), %v2694_v53 }
 0x374   : > { %v1783_v32 = vpop.xlane.xlu1 %1782  ;;  %1895 = vst.msk [vmem:[#allocation3 + $0x90] sm:$0xff] %vm1876_vm1, %v1862_v6  ;;  %v1936_v6 = vunpack.c.h.bf16 (!%p2615_p8), %v1916_v3  ;;  %2067 = vadd.xlane.f32.xlu1 (!%p2615_p8), %v2030_v13  ;;  %v2046_v13 = vmul.f32 (!%p2615_p8), %v2664_v60, %v1950_v57  ;;  %v2132_v60 = vld [vmem:[#allocation3 + $0x58] sm:$0xff] (!%p2615_p8) }
 0x375   : > { %v1863_v7 = vadd.f32 %v1783_v32, %v1671_v4  ;;  %v2687_v4 = vld [vmem:[%s3809_s7 + $0x18] sm:$0xff] (!%p2615_p8)  }
 0x376   : > { %v2636_v32 = vunpack.c.h.bf16 (!%p2615_p8), %v2687_v4 }
 0x377   : > { %1896 = vst.msk [vmem:[#allocation3 + $0x98] sm:$0xff] %vm1876_vm1, %v1863_v7  ;;  %v2029_v7 = vmul.f32 (!%p2615_p8), %v2631_v63, %v1933_v29  ;;  %v1949_v29 = vunpack.c.l.bf16 (!%p2615_p8), %v1923_v62  ;;  %v2663_v63 = vunpack.c.l.bf16 (!%p2615_p8), %v2694_v53  ;;  %v2129_v62 = vld [vmem:[#allocation3 + $0x40] sm:$0xff] (!%p2615_p8) }
 0x379   : > { %v1788_v14 = vpop.xlane.xlu0 %1787  ;;  %2065 = vadd.xlane.f32.xlu0 (!%p2615_p8), %v2029_v7  ;;  %v2045_v7 = vmul.f32 (!%p2615_p8), %v2663_v63, %v1949_v29 }
 0x37a   : > { %v1864_v33 = vadd.f32 %v1788_v14, %v1672_v10  ;;  %v1935_v10 = vunpack.c.l.bf16 (!%p2615_p8), %v1916_v3  ;;  %v1917_v14 = vld [vmem:[#allocation2 + $0x20] sm:$0xff] (!%p2615_p8)  ;;  %v1924_v3 = vld [vmem:[#allocation2 + $0x58] sm:$0xff] (!%p2615_p8) }
 0x37c   : > { %v1793_v16 = vpop.xlane.xlu1 %1792  ;;  %1897 = vst.msk [vmem:[#allocation3 + $0xa0] sm:$0xff] %vm1876_vm1, %v1864_v33  ;;  %v2688_v33 = vld [vmem:[%s3809_s7 + $0x20] sm:$0xff] (!%p2615_p8)  }
 0x37d   : > { %v1865_v15 = vadd.f32 %v1793_v16, %v1673_v11  ;;  %v2635_v11 = vunpack.c.l.bf16 (!%p2615_p8), %v2687_v4  ;;  %v2032_v16 = vmul.f32 (!%p2615_p8), %v2636_v32, %v1936_v6  ;;  %v2695_v4 = vld [vmem:[%s3809_s7 + $0x58] sm:$0xff] (!%p2615_p8)   ;;  %v1952_v6 = vunpack.c.h.bf16 (!%p2615_p8), %v1924_v3 }
 0x37e   : > { %v2668_v32 = vunpack.c.h.bf16 (!%p2615_p8), %v2695_v4 }
 0x37f   : > { %1898 = vst.msk [vmem:[#allocation3 + $0xa8] sm:$0xff] %vm1876_vm1, %v1865_v15  ;;  %v1938_v15 = vunpack.c.h.bf16 (!%p2615_p8), %v1917_v14  ;;  %2071 = vadd.xlane.f32.xlu1 (!%p2615_p8), %v2032_v16 }
 0x380   : > { %v2048_v16 = vmul.f32 (!%p2615_p8), %v2668_v32, %v1952_v6 }
 0x381   : > { %v1798_v22 = vpop.xlane.xlu0 %1797 }
 0x382   : > { %v1866_v36 = vadd.f32 %v1798_v22, %v1674_v18  ;;  %v2640_v18 = vunpack.c.h.bf16 (!%p2615_p8), %v2688_v33  ;;  %v1937_v22 = vunpack.c.l.bf16 (!%p2615_p8), %v1917_v14  ;;  %v1925_v14 = vld [vmem:[#allocation2 + $0x60] sm:$0xff] (!%p2615_p8) }
 0x384   : > { %v1803_v17 = vpop.xlane.xlu1 %1802  ;;  %1899 = vst.msk [vmem:[#allocation3 + $0xb0] sm:$0xff] %vm1876_vm1, %v1866_v36  ;;  %v2639_v36 = vunpack.c.l.bf16 (!%p2615_p8), %v2688_v33  ;;  %v2696_v33 = vld [vmem:[%s3809_s7 + $0x60] sm:$0xff] (!%p2615_p8)  }
 0x385   : > { %v1867_v0 = vadd.f32 %v1803_v17, %v1675_v19  ;;  %v2031_v19 = vmul.f32 (!%p2615_p8), %v2635_v11, %v1935_v10  ;;  %v1918_v17 = vld [vmem:[#allocation2 + $0x28] sm:$0xff] (!%p2615_p8)  ;;  %v1951_v10 = vunpack.c.l.bf16 (!%p2615_p8), %v1924_v3  ;;  %v2667_v11 = vunpack.c.l.bf16 (!%p2615_p8), %v2695_v4  ;;  %v2131_v3 = vld [vmem:[#allocation3 + $0x50] sm:$0xff] (!%p2615_p8) }
 0x387   : > { %1900 = vst.msk [vmem:[#allocation3 + $0xb8] sm:$0xff] %vm1876_vm1, %v1867_v0  ;;  %v2689_v0 = vld [vmem:[%s3809_s7 + $0x28] sm:$0xff] (!%p2615_p8)   ;;  %2069 = vadd.xlane.f32.xlu0 (!%p2615_p8), %v2031_v19  ;;  %v2047_v19 = vmul.f32 (!%p2615_p8), %v2667_v11, %v1951_v10 }
 0x388   : > { %v2134_v11 = vld [vmem:[#allocation3 + $0x68] sm:$0xff] (!%p2615_p8) }
 0x389   : > { %v1808_v37 = vpop.xlane.xlu0 %1807 }
 0x38a   : > { %v1868_v26 = vadd.f32 %v1808_v37, %v1676_v2  ;;  %v2034_v2 = vmul.f32 (!%p2615_p8), %v2640_v18, %v1938_v15  ;;  %v2644_v37 = vunpack.c.h.bf16 (!%p2615_p8), %v2689_v0  ;;  %v1954_v15 = vunpack.c.h.bf16 (!%p2615_p8), %v1925_v14 }
 0x38b   : > { %v2672_v18 = vunpack.c.h.bf16 (!%p2615_p8), %v2696_v33 }
 0x38c   : > { %v1813_v1 = vpop.xlane.xlu1 %1812  ;;  %1901 = vst.msk [vmem:[#allocation3 + $0xc0] sm:$0xff] %vm1876_vm1, %v1868_v26  ;;  %v2033_v26 = vmul.f32 (!%p2615_p8), %v2639_v36, %v1937_v22  ;;  %2075 = vadd.xlane.f32.xlu1 (!%p2615_p8), %v2034_v2  ;;  %v1953_v22 = vunpack.c.l.bf16 (!%p2615_p8), %v1925_v14  ;;  %v2671_v36 = vunpack.c.l.bf16 (!%p2615_p8), %v2696_v33 }
 0x38d   : > { %v1869_v20 = vadd.f32 %v1813_v1, %v1677_v23  ;;  %v1940_v23 = vunpack.c.h.bf16 (!%p2615_p8), %v1918_v17  ;;  %v1939_v1 = vunpack.c.l.bf16 (!%p2615_p8), %v1918_v17  ;;  %v1926_v17 = vld [vmem:[#allocation2 + $0x68] sm:$0xff] (!%p2615_p8)  ;;  %v2050_v2 = vmul.f32 (!%p2615_p8), %v2672_v18, %v1954_v15  ;;  %v2133_v18 = vld [vmem:[#allocation3 + $0x60] sm:$0xff] (!%p2615_p8) }
 0x38e   : > { %2073 = vadd.xlane.f32.xlu0 (!%p2615_p8), %v2033_v26  ;;  %v2049_v26 = vmul.f32 (!%p2615_p8), %v2671_v36, %v1953_v22 }
 0x38f   : > { %1902 = vst.msk [vmem:[#allocation3 + $0xc8] sm:$0xff] %vm1876_vm1, %v1869_v20  ;;  %v2643_v20 = vunpack.c.l.bf16 (!%p2615_p8), %v2689_v0  ;;  %v2697_v0 = vld [vmem:[%s3809_s7 + $0x68] sm:$0xff] (!%p2615_p8)  }
 0x391   : > { %v1818_v40 = vpop.xlane.xlu0 %1817 }
 0x392   : > { %v1870_v30 = vadd.f32 %v1818_v40, %v1678_v27  ;;  %v1919_v27 = vld [vmem:[#allocation2 + $0x30] sm:$0xff] (!%p2615_p8)  ;;  %v2036_v40 = vmul.f32 (!%p2615_p8), %v2644_v37, %v1940_v23  ;;  %v1956_v23 = vunpack.c.h.bf16 (!%p2615_p8), %v1926_v17  ;;  %v2676_v37 = vunpack.c.h.bf16 (!%p2615_p8), %v2697_v0 }
 0x394   : > { %v1823_v31 = vpop.xlane.xlu1 %1822  ;;  %1903 = vst.msk [vmem:[#allocation3 + $0xd0] sm:$0xff] %vm1876_vm1, %v1870_v30  ;;  %v1942_v30 = vunpack.c.h.bf16 (!%p2615_p8), %v1919_v27  ;;  %2079 = vadd.xlane.f32.xlu1 (!%p2615_p8), %v2036_v40  ;;  %v2052_v40 = vmul.f32 (!%p2615_p8), %v2676_v37, %v1956_v23  ;;  %v2136_v23 = vld [vmem:[#allocation3 + $0x78] sm:$0xff] (!%p2615_p8) }
 0x395   : > { %v1871_v21 = vadd.f32 %v1823_v31, %v1679_v5  ;;  %v2690_v5 = vld [vmem:[%s3809_s7 + $0x30] sm:$0xff] (!%p2615_p8)  }
 0x396   : > { %v2648_v31 = vunpack.c.h.bf16 (!%p2615_p8), %v2690_v5 }
 0x397   : > { %1904 = vst.msk [vmem:[#allocation3 + $0xd8] sm:$0xff] %vm1876_vm1, %v1871_v21  ;;  %v2035_v21 = vmul.f32 (!%p2615_p8), %v2643_v20, %v1939_v1  ;;  %v1955_v1 = vunpack.c.l.bf16 (!%p2615_p8), %v1926_v17  ;;  %v2675_v20 = vunpack.c.l.bf16 (!%p2615_p8), %v2697_v0 }
 0x398   : > { %v1828_v41 = vpop.xlane.xlu0 %1827 }
 0x399   : > { %v1872_v35 = vadd.f32 %v1828_v41, %v1680_v34  ;;  %v1941_v34 = vunpack.c.l.bf16 (!%p2615_p8), %v1919_v27  ;;  %v2647_v41 = vunpack.c.l.bf16 (!%p2615_p8), %v2690_v5  ;;  %2077 = vadd.xlane.f32.xlu0 (!%p2615_p8), %v2035_v21  ;;  %v1927_v27 = vld [vmem:[#allocation2 + $0x70] sm:$0xff] (!%p2615_p8)  ;;  %v2051_v21 = vmul.f32 (!%p2615_p8), %v2675_v20, %v1955_v1 }
 0x39a   : > { %v2698_v5 = vld [vmem:[%s3809_s7 + $0x70] sm:$0xff] (!%p2615_p8)  }
 0x39b   : > { %1905 = vst.msk [vmem:[#allocation3 + $0xe0] sm:$0xff] %vm1876_vm1, %v1872_v35  ;;  %v1833_v39 = vpop.xlane.xlu1 %1832  ;;  %v1920_v35 = vld [vmem:[#allocation2 + $0x38] sm:$0xff] (!%p2615_p8) }
 0x39c   : > { %v1873_v42 = vadd.f32 %v1833_v39, %v1681_v38  ;;  %v2691_v38 = vld [vmem:[%s3809_s7 + $0x38] sm:$0xff] (!%p2615_p8)   ;;  %v2038_v39 = vmul.f32 (!%p2615_p8), %v2648_v31, %v1942_v30  ;;  %v1958_v30 = vunpack.c.h.bf16 (!%p2615_p8), %v1927_v27  ;;  %v2680_v31 = vunpack.c.h.bf16 (!%p2615_p8), %v2698_v5 }
 0x39e   : > { %1906 = vst.msk [vmem:[#allocation3 + $0xe8] sm:$0xff] %vm1876_vm1, %v1873_v42  ;;  %v1944_v42 = vunpack.c.h.bf16 (!%p2615_p8), %v1920_v35  ;;  %2083 = vadd.xlane.f32.xlu1 (!%p2615_p8), %v2038_v39  ;;  %v2054_v39 = vmul.f32 (!%p2615_p8), %v2680_v31, %v1958_v30 }
 0x39f   : > { %1912 = sbr.rel (%p2615_p8) target bundleno = 1112 (0x458), region = 52 }
 0x3a0   : > { %v1838_v24 = vpop.xlane.xlu0 %1837 }
 0x3a1   : > { %v1874_v8 = vadd.f32 %v1838_v24, %v1682_v44  ;;  %v2652_v44 = vunpack.c.h.bf16 (!%p2615_p8), %v2691_v38  ;;  %v2037_v24 = vmul.f32 (!%p2615_p8), %v2647_v41, %v1941_v34  ;;  %v1957_v34 = vunpack.c.l.bf16 (!%p2615_p8), %v1927_v27  ;;  %v2135_v27 = vld [vmem:[#allocation3 + $0x70] sm:$0xff] (!%p2615_p8) }
 0x3a2   : > { %v1843_v46 = vpop.xlane.xlu1 %1842  ;;  %v2679_v41 = vunpack.c.l.bf16 (!%p2615_p8), %v2698_v5 }
 0x3a3   : > { %1907 = vst.msk [vmem:[#allocation3 + $0xf0] sm:$0xff] %vm1876_vm1, %v1874_v8  ;;  %v1875_v45 = vadd.f32 %v1843_v46, %v1683_v43  ;;  %v1943_v8 = vunpack.c.l.bf16 (!%p2615_p8), %v1920_v35  ;;  %v2651_v43 = vunpack.c.l.bf16 (!%p2615_p8), %v2691_v38  ;;  %v1921_v46 = vld [vmem:[#allocation2 + $0x40] sm:$0xff] (!%p2615_p8)  ;;  %v2040_v47 = vmul.f32 (!%p2615_p8), %v2652_v44, %v1944_v42  ;;  %2081 = vadd.xlane.f32.xlu0 (!%p2615_p8), %v2037_v24  ;;  %v1928_v35 = vld [vmem:[#allocation2 + $0x78] sm:$0xff] (!%p2615_p8) }
 0x3a4   : > { %v1946_v25 = vunpack.c.h.bf16 (!%p2615_p8), %v1921_v46  ;;  %v1945_v51 = vunpack.c.l.bf16 (!%p2615_p8), %v1921_v46  ;;  %v2699_v38 = vld [vmem:[%s3809_s7 + $0x78] sm:$0xff] (!%p2615_p8)   ;;  %v1960_v42 = vunpack.c.h.bf16 (!%p2615_p8), %v1928_v35  ;;  %v2053_v24 = vmul.f32 (!%p2615_p8), %v2679_v41, %v1957_v34  ;;  %v2138_v41 = vld [vmem:[#allocation3 + $0x88] sm:$0xff] (!%p2615_p8) }
 0x3a5   : > { %1908 = vst.msk [vmem:[#allocation3 + $0xf8] sm:$0xff] %vm1876_vm1, %v1875_v45  ;;  %v2692_v45 = vld [vmem:[%s3809_s7 + $0x40] sm:$0xff] (!%p2615_p8)   ;;  %v2039_v9 = vmul.f32 (!%p2615_p8), %v2651_v43, %v1943_v8  ;;  %2087 = vadd.xlane.f32.xlu1 (!%p2615_p8), %v2040_v47  ;;  %v2684_v44 = vunpack.c.h.bf16 (!%p2615_p8), %v2699_v38  ;;  %v1959_v8 = vunpack.c.l.bf16 (!%p2615_p8), %v1928_v35  ;;  %v2683_v43 = vunpack.c.l.bf16 (!%p2615_p8), %v2699_v38  ;;  %v2123_v47 = vld [vmem:[#allocation3 + $0x10] sm:$0xff] (!%p2615_p8) }
 0x3a6   : > { %v2656_v50 = vunpack.c.h.bf16 %v2692_v45  ;;  %v2655_v54 = vunpack.c.l.bf16 %v2692_v45  ;;  %3258 = vlog2.f32 %v2123_v47 }
 0x3a7   : > { %2085 = vadd.xlane.f32.xlu0 %v2039_v9  ;;  %v2056_v46 = vmul.f32 %v2684_v44, %v1960_v42  ;;  %v2055_v45 = vmul.f32 %v2683_v43, %v1959_v8  ;;  %v2122_v9 = vld [vmem:[#allocation3 + $0x8] sm:$0xff]  ;;  %v2137_v44 = vld [vmem:[#allocation3 + $0x80] sm:$0xff] }
 0x3a8   : > { %v2042_v49 = vmul.f32 %v2656_v50, %v1946_v25  ;;  %v2041_v59 = vmul.f32 %v2655_v54, %v1945_v51  ;;  %v2121_v25 = vld [vmem:[#allocation3] sm:$0xff]  ;;  %v2124_v50 = vld [vmem:[#allocation3 + $0x18] sm:$0xff]  ;;  %v2126_v51 = vld [vmem:[#allocation3 + $0x28] sm:$0xff] }
 0x3a9   : > { %3260 = vlog2.f32 %v2121_v25  ;;  %v2125_v54 = vld [vmem:[#allocation3 + $0x20] sm:$0xff]  ;;  %v2140_v25 = vld [vmem:[#allocation3 + $0x98] sm:$0xff] }
 0x3aa   : > { %2091 = vadd.xlane.f32.xlu1 %v2042_v49  ;;  %3262 = vlog2.f32 %v2124_v50  ;;  %v2127_v49 = vld [vmem:[#allocation3 + $0x30] sm:$0xff] }
 0x3ab   : > { %2089 = vadd.xlane.f32.xlu0 %v2041_v59  ;;  %3264 = vlog2.f32 %v2122_v9  ;;  %v2130_v59 = vld [vmem:[#allocation3 + $0x48] sm:$0xff] }
 0x3ac   : > { %3266 = vlog2.f32 %v2126_v51 }
 0x3ad   : > { %3268 = vlog2.f32 %v2125_v54 }
 0x3ae   : > { %2095 = vadd.xlane.f32.xlu1 %v2044_v56  ;;  %3270 = vlog2.f32 %v2128_v48  ;;  %v2139_v48 = vld [vmem:[#allocation3 + $0x90] sm:$0xff] }
 0x3af   : > { %2093 = vadd.xlane.f32.xlu0 %v2043_v61  ;;  %3272 = vlog2.f32 %v2127_v49 }
 0x3b0   : > { %v3259_v55 = vpop.eup %3258  ;;  %3274 = vlog2.f32 %v2130_v59 }
 0x3b1   : > { %v2158_v58 = vmul.f32 0.6931472, %v3259_v55  ;;  %3276 = vlog2.f32 %v2129_v62 }
 0x3b2   : > { %2099 = vadd.xlane.f32.xlu1 %v2046_v13  ;;  %3278 = vlog2.f32 %v2132_v60  ;;  %v2141_v60 = vld [vmem:[#allocation3 + $0xa0] sm:$0xff] }
 0x3b3   : > { %2097 = vadd.xlane.f32.xlu0 %v2045_v7  ;;  %v3261_v28 = vpop.eup %3260  ;;  %v2219_v56 = vadd.f32 2.0, %v2158_v58  ;;  %3280 = vlog2.f32 %v2131_v3 }
 0x3b4   : > { %v3263_v12 = vpop.eup %3262  ;;  %v2154_v52 = vmul.f32 0.6931472, %v3261_v28  ;;  %3282 = vlog2.f32 %v2134_v11 }
 0x3b5   : > { %v3265_v53 = vpop.eup %3264  ;;  %v2160_v57 = vmul.f32 0.6931472, %v3263_v12  ;;  %3284 = vlog2.f32 %v2133_v18 }
 0x3b6   : > { %2103 = vadd.xlane.f32.xlu1 %v2048_v16  ;;  %v3267_v61 = vpop.eup %3266  ;;  %v2217_v29 = vadd.f32 2.0, %v2154_v52  ;;  %v2156_v63 = vmul.f32 0.6931472, %v3265_v53  ;;  %3286 = vlog2.f32 %v2136_v23  ;;  %v2142_v52 = vld [vmem:[#allocation3 + $0xa8] sm:$0xff] }
 0x3b7   : > { %2101 = vadd.xlane.f32.xlu0 %v2047_v19  ;;  %v3269_v4 = vpop.eup %3268  ;;  %v2220_v7 = vadd.f32 2.0, %v2160_v57  ;;  %v2164_v10 = vmul.f32 0.6931472, %v3267_v61  ;;  %3288 = vlog2.f32 %v2135_v27 }
 0x3b8   : > { %v3271_v14 = vpop.eup %3270  ;;  %v2218_v16 = vadd.f32 2.0, %v2156_v63  ;;  %v2162_v15 = vmul.f32 0.6931472, %v3269_v4  ;;  %3290 = vlog2.f32 %v2138_v41 }
 0x3b9   : > { %v3273_v19 = vpop.eup %3272  ;;  %v2222_v0 = vadd.f32 2.0, %v2164_v10  ;;  %3292 = vlog2.f32 %v2137_v44 }
 0x3ba   : > { %2107 = vadd.xlane.f32.xlu1 %v2050_v2  ;;  %v2168_v2 = vmul.f32 0.6931472, %v3271_v14  ;;  %v3275_v37 = vpop.eup %3274  ;;  %v2221_v1 = vadd.f32 2.0, %v2162_v15  ;;  %v2166_v20 = vmul.f32 0.6931472, %v3273_v19  ;;  %3294 = vlog2.f32 %v2140_v25  ;;  %v2143_v14 = vld [vmem:[#allocation3 + $0xb0] sm:$0xff] }
 0x3bb   : > { %2105 = vadd.xlane.f32.xlu0 %v2049_v26  ;;  %v3277_v5 = vpop.eup %3276  ;;  %v2172_v34 = vmul.f32 0.6931472, %v3275_v37  ;;  %3296 = vlog2.f32 %v2139_v48  ;;  %v2145_v37 = vld [vmem:[#allocation3 + $0xc0] sm:$0xff] }
 0x3bc   : > { %v3279_v35 = vpop.eup %3278  ;;  %v2170_v42 = vmul.f32 0.6931472, %v3277_v5  ;;  %3298 = vlog2.f32 %v2142_v52 }
 0x3bd   : > { %v2176_v47 = vmul.f32 0.6931472, %v3279_v35  ;;  %3300 = vlog2.f32 %v2141_v60  ;;  %v2147_v35 = vld [vmem:[#allocation3 + $0xd0] sm:$0xff] }
 0x3be   : > { %2111 = vadd.xlane.f32.xlu1 %v2052_v40  ;;  %v2225_v51 = vadd.f32 2.0, %v2170_v42 }
 0x3bf   : > { %2109 = vadd.xlane.f32.xlu0 %v2051_v21  ;;  %v2224_v21 = vadd.f32 2.0, %v2168_v2  ;;  %v2228_v59 = vadd.f32 2.0, %v2176_v47 }
 0x3c2   : > { %2115 = vadd.xlane.f32.xlu1 %v2054_v39  ;;  %v2223_v39 = vadd.f32 2.0, %v2166_v20 }
 0x3c3   : > { %2113 = vadd.xlane.f32.xlu0 %v2053_v24  ;;  %v3281_v24 = vpop.eup %3280 }
 0x3c4   : > { %v3283_v50 = vpop.eup %3282  ;;  %v2174_v54 = vmul.f32 0.6931472, %v3281_v24 }
 0x3c5   : > { %v3285_v55 = vpop.eup %3284  ;;  %v2180_v12 = vmul.f32 0.6931472, %v3283_v50  ;;  %v2149_v50 = vld [vmem:[#allocation3 + $0xe0] sm:$0xff] }
 0x3c6   : > { %2119 = vadd.xlane.f32.xlu1 %v2056_v46  ;;  %v3287_v62 = vpop.eup %3286  ;;  %v2178_v57 = vmul.f32 0.6931472, %v3285_v55 }
 0x3c7   : > { %2117 = vadd.xlane.f32.xlu0 %v2055_v45  ;;  %v2226_v45 = vadd.f32 2.0, %v2172_v34  ;;  %v3289_v61 = vpop.eup %3288  ;;  %v2230_v4 = vadd.f32 2.0, %v2180_v12 }
 0x3c8   : > { %v2229_v10 = vadd.f32 2.0, %v2178_v57  ;;  %v2182_v11 = vmul.f32 0.6931472, %v3289_v61 }
 0x3ca   : > { %v2231_v2 = vadd.f32 2.0, %v2182_v11 }
 0x3f4   : > { %v2062_v13 = vpop.xlane.xlu1 %2061 }
 0x3f5   : > { %v2251_v6 = vsub.f32 %v2219_v56, %v2062_v13  ;;  %v2227_v56 = vadd.f32 2.0, %v2174_v54  ;;  %v2184_v13 = vmul.f32 0.6931472, %v3287_v62  ;;  %v2151_v62 = vld [vmem:[#allocation3 + $0xf0] sm:$0xff] }
 0x3f6   : > { %v2058_v32 = vpop.xlane.xlu0 %2057 }
 0x3f7   : > { %v2249_v33 = vsub.f32 %v2217_v29, %v2058_v32  ;;  %2283 = vst.msk [vmem:[%s3819_s25 + $0x10] sm:$0xff] %vm1876_vm1, %v2251_v6  ;;  %v2144_v6 = vld [vmem:[#allocation3 + $0xb8] sm:$0xff]  ;;  %v3291_v32 = vpop.eup %3290  ;;  %v2232_v19 = vadd.f32 2.0, %v2184_v13 }
 0x3f8   : > { %3302 = vlog2.f32 %v2144_v6 }
 0x3f9   : > { %2281 = vst.msk [vmem:[%s3819_s25] sm:$0xff] %vm1876_vm1, %v2249_v33  ;;  %v2064_v22 = vpop.xlane.xlu1 %2063  ;;  %v3293_v33 = vpop.eup %3292  ;;  %3304 = vlog2.f32 %v2143_v14 }
 0x3fa   : > { %v2252_v36 = vsub.f32 %v2220_v7, %v2064_v22  ;;  %v2188_v22 = vmul.f32 0.6931472, %v3291_v32  ;;  %v2186_v23 = vmul.f32 0.6931472, %v3293_v33 }
 0x3fb   : > { %v2060_v17 = vpop.xlane.xlu0 %2059 }
 0x3fc   : > { %v2250_v26 = vsub.f32 %v2218_v16, %v2060_v17  ;;  %2284 = vst.msk [vmem:[%s3819_s25 + $0x18] sm:$0xff] %vm1876_vm1, %v2252_v36  ;;  %v2146_v36 = vld [vmem:[#allocation3 + $0xc8] sm:$0xff]  ;;  %v3295_v17 = vpop.eup %3294  ;;  %v2234_v5 = vadd.f32 2.0, %v2188_v22  ;;  %v2233_v34 = vadd.f32 2.0, %v2186_v23 }
 0x3fd   : > { %3306 = vlog2.f32 %v2146_v36 }
 0x3fe   : > { %2282 = vst.msk [vmem:[%s3819_s25 + $0x8] sm:$0xff] %vm1876_vm1, %v2250_v26  ;;  %v3297_v26 = vpop.eup %3296  ;;  %3308 = vlog2.f32 %v2145_v37 }
 0x3ff   : > { %v2190_v41 = vmul.f32 0.6931472, %v3297_v26 }
 0x401   : > { %v2068_v40 = vpop.xlane.xlu1 %2067  ;;  %v2235_v47 = vadd.f32 2.0, %v2190_v41 }
 0x402   : > { %v2254_v30 = vsub.f32 %v2222_v0, %v2068_v40  ;;  %v2192_v40 = vmul.f32 0.6931472, %v3295_v17 }
 0x404   : > { %2286 = vst.msk [vmem:[%s3819_s25 + $0x28] sm:$0xff] %vm1876_vm1, %v2254_v30  ;;  %v2148_v30 = vld [vmem:[#allocation3 + $0xd8] sm:$0xff]  ;;  %v2236_v24 = vadd.f32 2.0, %v2192_v40 }
 0x405   : > { %3310 = vlog2.f32 %v2148_v30 }
 0x406   : > { %v2066_v31 = vpop.xlane.xlu0 %2065  ;;  %3312 = vlog2.f32 %v2147_v35 }
 0x407   : > { %v2253_v38 = vsub.f32 %v2221_v1, %v2066_v31  ;;  %v3299_v31 = vpop.eup %3298 }
 0x409   : > { %2285 = vst.msk [vmem:[%s3819_s25 + $0x20] sm:$0xff] %vm1876_vm1, %v2253_v38  ;;  %v3301_v38 = vpop.eup %3300 }
 0x40a   : > { %v2194_v25 = vmul.f32 0.6931472, %v3301_v38 }
 0x40c   : > { %v2072_v8 = vpop.xlane.xlu1 %2071  ;;  %v2237_v12 = vadd.f32 2.0, %v2194_v25 }
 0x40d   : > { %v2256_v43 = vsub.f32 %v2224_v21, %v2072_v8  ;;  %v2196_v8 = vmul.f32 0.6931472, %v3299_v31 }
 0x40f   : > { %2288 = vst.msk [vmem:[%s3819_s25 + $0x38] sm:$0xff] %vm1876_vm1, %v2256_v43  ;;  %v2150_v43 = vld [vmem:[#allocation3 + $0xe8] sm:$0xff]  ;;  %v2238_v55 = vadd.f32 2.0, %v2196_v8 }
 0x410   : > { %3314 = vlog2.f32 %v2150_v43 }
 0x411   : > { %3316 = vlog2.f32 %v2149_v50 }
 0x414   : > { %v2070_v46 = vpop.xlane.xlu0 %2069 }
 0x415   : > { %v2255_v9 = vsub.f32 %v2223_v39, %v2070_v46  ;;  %v3303_v46 = vpop.eup %3302 }
 0x417   : > { %2287 = vst.msk [vmem:[%s3819_s25 + $0x30] sm:$0xff] %vm1876_vm1, %v2255_v9  ;;  %v3305_v9 = vpop.eup %3304 }
 0x418   : > { %v2198_v52 = vmul.f32 0.6931472, %v3305_v9 }
 0x419   : > { %v2076_v49 = vpop.xlane.xlu1 %2075 }
 0x41a   : > { %v2258_v28 = vsub.f32 %v2226_v45, %v2076_v49  ;;  %v2200_v49 = vmul.f32 0.6931472, %v3303_v46 }
 0x41b   : > { %v2074_v58 = vpop.xlane.xlu0 %2073 }
 0x41c   : > { %v2257_v53 = vsub.f32 %v2225_v51, %v2074_v58  ;;  %2290 = vst.msk [vmem:[%s3819_s25 + $0x48] sm:$0xff] %vm1876_vm1, %v2258_v28  ;;  %v2152_v28 = vld [vmem:[#allocation3 + $0xf8] sm:$0xff]  ;;  %v3307_v58 = vpop.eup %3306  ;;  %v2240_v61 = vadd.f32 2.0, %v2200_v49 }
 0x41d   : > { %3318 = vlog2.f32 %v2152_v28 }
 0x41e   : > { %2289 = vst.msk [vmem:[%s3819_s25 + $0x40] sm:$0xff] %vm1876_vm1, %v2257_v53  ;;  %v3309_v53 = vpop.eup %3308  ;;  %3320 = vlog2.f32 %v2151_v62 }
 0x41f   : > { %v2202_v13 = vmul.f32 0.6931472, %v3309_v53 }
 0x421   : > { %v2080_v29 = vpop.xlane.xlu1 %2079 }
 0x422   : > { %v2260_v63 = vsub.f32 %v2228_v59, %v2080_v29  ;;  %v2204_v29 = vmul.f32 0.6931472, %v3307_v58 }
 0x424   : > { %2292 = vst.msk [vmem:[%s3819_s25 + $0x58] sm:$0xff] %vm1876_vm1, %v2260_v63  ;;  %v3311_v63 = vpop.eup %3310  ;;  %v2242_v11 = vadd.f32 2.0, %v2204_v29 }
 0x425   : > { %v3313_v6 = vpop.eup %3312  ;;  %v2208_v14 = vmul.f32 0.6931472, %v3311_v63 }
 0x426   : > { %v2078_v3 = vpop.xlane.xlu0 %2077  ;;  %v3315_v33 = vpop.eup %3314 }
 0x427   : > { %v2259_v7 = vsub.f32 %v2227_v56, %v2078_v3 }
 0x429   : > { %2291 = vst.msk [vmem:[%s3819_s25 + $0x50] sm:$0xff] %vm1876_vm1, %v2259_v7 }
 0x42b   : > { %v2084_v16 = vpop.xlane.xlu1 %2083 }
 0x42c   : > { %v2262_v15 = vsub.f32 %v2230_v4, %v2084_v16  ;;  %v2239_v4 = vadd.f32 2.0, %v2198_v52 }
 0x42e   : > { %2294 = vst.msk [vmem:[%s3819_s25 + $0x68] sm:$0xff] %vm1876_vm1, %v2262_v15  ;;  %v2241_v15 = vadd.f32 2.0, %v2202_v13 }
 0x430   : > { %v2082_v18 = vpop.xlane.xlu0 %2081 }
 0x431   : > { %v2261_v0 = vsub.f32 %v2229_v10, %v2082_v18  ;;  %v2206_v18 = vmul.f32 0.6931472, %v3313_v6 }
 0x432   : > { %v2088_v1 = vpop.xlane.xlu1 %2087 }
 0x433   : > { %2293 = vst.msk [vmem:[%s3819_s25 + $0x60] sm:$0xff] %vm1876_vm1, %v2261_v0  ;;  %v2264_v20 = vsub.f32 %v2232_v19, %v2088_v1  ;;  %v3317_v19 = vpop.eup %3316  ;;  %v2244_v0 = vadd.f32 2.0, %v2208_v14  ;;  %v2243_v26 = vadd.f32 2.0, %v2206_v18 }
 0x434   : > { %v2086_v27 = vpop.xlane.xlu0 %2085  ;;  %v3319_v23 = vpop.eup %3318  ;;  %v2210_v1 = vmul.f32 0.6931472, %v3317_v19 }
 0x435   : > { %v2263_v21 = vsub.f32 %v2231_v2, %v2086_v27  ;;  %2296 = vst.msk [vmem:[%s3819_s25 + $0x78] sm:$0xff] %vm1876_vm1, %v2264_v20  ;;  %v2212_v2 = vmul.f32 0.6931472, %v3315_v33  ;;  %v3321_v20 = vpop.eup %3320  ;;  %v2216_v31 = vmul.f32 0.6931472, %v3319_v23 }
 0x436   : > { %v2214_v41 = vmul.f32 0.6931472, %v3321_v20 }
 0x437   : > { %2295 = vst.msk [vmem:[%s3819_s25 + $0x70] sm:$0xff] %vm1876_vm1, %v2263_v21  ;;  %v2092_v39 = vpop.xlane.xlu1 %2091  ;;  %v2246_v30 = vadd.f32 2.0, %v2212_v2 }
 0x438   : > { %v2266_v42 = vsub.f32 %v2234_v5, %v2092_v39  ;;  %v2090_v44 = vpop.xlane.xlu0 %2089 }
 0x439   : > { %v2265_v45 = vsub.f32 %v2233_v34, %v2090_v44  ;;  %v2245_v34 = vadd.f32 2.0, %v2210_v1 }
 0x43a   : > { %2298 = vst.msk [vmem:[%s3819_s25 + $0x88] sm:$0xff] %vm1876_vm1, %v2266_v42  ;;  %v2248_v42 = vadd.f32 2.0, %v2216_v31 }
 0x43b   : > { %2297 = vst.msk [vmem:[%s3819_s25 + $0x80] sm:$0xff] %vm1876_vm1, %v2265_v45  ;;  %v2096_v51 = vpop.xlane.xlu1 %2095 }
 0x43c   : > { %v2268_v54 = vsub.f32 %v2236_v24, %v2096_v51  ;;  %v2094_v48 = vpop.xlane.xlu0 %2093  ;;  %v2247_v24 = vadd.f32 2.0, %v2214_v41 }
 0x43d   : > { %v2267_v59 = vsub.f32 %v2235_v47, %v2094_v48 }
 0x43e   : > { %2300 = vst.msk [vmem:[%s3819_s25 + $0x98] sm:$0xff] %vm1876_vm1, %v2268_v54 }
 0x43f   : > { %2299 = vst.msk [vmem:[%s3819_s25 + $0x90] sm:$0xff] %vm1876_vm1, %v2267_v59  ;;  %v2100_v56 = vpop.xlane.xlu1 %2099 }
 0x440   : > { %v2270_v57 = vsub.f32 %v2238_v55, %v2100_v56  ;;  %v2098_v60 = vpop.xlane.xlu0 %2097 }
 0x441   : > { %v2269_v3 = vsub.f32 %v2237_v12, %v2098_v60 }
 0x442   : > { %2302 = vst.msk [vmem:[%s3819_s25 + $0xa8] sm:$0xff] %vm1876_vm1, %v2270_v57 }
 0x443   : > { %2301 = vst.msk [vmem:[%s3819_s25 + $0xa0] sm:$0xff] %vm1876_vm1, %v2269_v3  ;;  %v2104_v32 = vpop.xlane.xlu1 %2103 }
 0x444   : > { %v2272_v7 = vsub.f32 %v2240_v61, %v2104_v32  ;;  %v2102_v10 = vpop.xlane.xlu0 %2101 }
 0x445   : > { %v2271_v16 = vsub.f32 %v2239_v4, %v2102_v10 }
 0x446   : > { %2304 = vst.msk [vmem:[%s3819_s25 + $0xb8] sm:$0xff] %vm1876_vm1, %v2272_v7 }
 0x447   : > { %2303 = vst.msk [vmem:[%s3819_s25 + $0xb0] sm:$0xff] %vm1876_vm1, %v2271_v16  ;;  %v2108_v22 = vpop.xlane.xlu1 %2107 }
 0x448   : > { %v2274_v36 = vsub.f32 %v2242_v11, %v2108_v22  ;;  %v2106_v17 = vpop.xlane.xlu0 %2105 }
 0x449   : > { %v2273_v37 = vsub.f32 %v2241_v15, %v2106_v17 }
 0x44a   : > { %2306 = vst.msk [vmem:[%s3819_s25 + $0xc8] sm:$0xff] %vm1876_vm1, %v2274_v36 }
 0x44b   : > { %2305 = vst.msk [vmem:[%s3819_s25 + $0xc0] sm:$0xff] %vm1876_vm1, %v2273_v37  ;;  %v2112_v27 = vpop.xlane.xlu1 %2111 }
 0x44c   : > { %v2276_v5 = vsub.f32 %v2244_v0, %v2112_v27  ;;  %v2110_v40 = vpop.xlane.xlu0 %2109 }
 0x44d   : > { %v2275_v21 = vsub.f32 %v2243_v26, %v2110_v40 }
 0x44e   : > { %2308 = vst.msk [vmem:[%s3819_s25 + $0xd8] sm:$0xff] %vm1876_vm1, %v2276_v5 }
 0x44f   : > { %2307 = vst.msk [vmem:[%s3819_s25 + $0xd0] sm:$0xff] %vm1876_vm1, %v2275_v21  ;;  %v2116_v35 = vpop.xlane.xlu1 %2115 }
 0x450   : > { %v2278_v38 = vsub.f32 %v2246_v30, %v2116_v35  ;;  %v2114_v39 = vpop.xlane.xlu0 %2113 }
 0x451   : > { %v2277_v44 = vsub.f32 %v2245_v34, %v2114_v39 }
 0x452   : > { %2310 = vst.msk [vmem:[%s3819_s25 + $0xe8] sm:$0xff] %vm1876_vm1, %v2278_v38 }
 0x453   : > { %2309 = vst.msk [vmem:[%s3819_s25 + $0xe0] sm:$0xff] %vm1876_vm1, %v2277_v44  ;;  %v2120_v8 = vpop.xlane.xlu1 %2119 }
 0x454   : > { %v2280_v43 = vsub.f32 %v2248_v42, %v2120_v8  ;;  %v2118_v46 = vpop.xlane.xlu0 %2117 }
 0x455   : > { %v2279_v45 = vsub.f32 %v2247_v24, %v2118_v46 }
 0x456   : > { %2312 = vst.msk [vmem:[%s3819_s25 + $0xf8] sm:$0xff] %vm1876_vm1, %v2280_v43 }
 0x457   : > { %2311 = vst.msk [vmem:[%s3819_s25 + $0xf0] sm:$0xff] %vm1876_vm1, %v2279_v45 }
 0x458 PF: > { %s19_s22 = sadd.s32 1, %s3510_s22   ;;  %s4263_s18 = sld [smem:[#allocation12_spill]] }
 0x459   : > { %p16_p2 = scmp.ge.s32.totalorder %s19_s22, 10   ;;  %s4264_s20 = sld [smem:[#allocation13_spill]] }
 0x45a   : > { %s4265_s29 = sld [smem:[#allocation14_spill]]  ;;  %s4266_s12 = smov %s3474_s13 }
 0x45b   : > { %s4267_s13 = smov %s3478_s14  ;;  %s4268_s14 = smov %s3626_s30 }
 0x45c   : > { %s4269_s15 = smov %s3486_s16  ;;  %s4270_s16 = smov %s3490_s17 }
 0x45d   : > { %s4271_s17 = smov %s3715_s8  ;;  %s4272_s19 = smov %s3506_s21 }
 0x45e   :  { %18 = sbr.rel (!%p16_p2) target bundleno = 12 (0xc), region = 104 }
 0x460   : > { %s4273_s21 = smov %s4265_s29 }
 0x465   :  { %2335 = vsyncpa [#allocation5], 1 }
 0x466   :  { %2337 = vsyncpa [#allocation5 + $0x1], 1 }
 0x467   :  { %2338 = vsyncpa [#allocation7], 1 }
 0x468   :  { %2340 = vsyncpa [#allocation7 + $0x1], 1 }

</bundles_post_ra>
